<compile_context>
chip_gen: v7x
topology: tpu7x:2x2x1
jax: 0.10.0
libtpu: 0.0.40
codegen_flags: <defaults>
</compile_context>

<pallas_src>
import functools

import jax
import jax.numpy as jnp
from jax.experimental import pallas as pl
from jax.experimental.pallas import tpu as pltpu

HIDDEN_SIZE = 16
INPUT_SIZE = 48
NUM_CLASSES = 2
NUM_LAYERS = 3

_G = 3 * HIDDEN_SIZE          # gate width (48) == slab column width
_SLAB_W = _G


def _round8(n):
    return ((n + 7) // 8) * 8


# Static, 8-row-aligned layout of the parameter slab.
_LAYER_OFFSETS = []
_row = 0
for _l in range(NUM_LAYERS):
    _d_in = INPUT_SIZE if _l == 0 else HIDDEN_SIZE
    _wih_off = _row
    _row += _round8(_d_in)
    _whh_off = _row
    _row += _round8(HIDDEN_SIZE)
    _bias_off = _row          # row +0: b_gx (1,3H); row +1: b_hn (1,H) padded
    _row += 8
    _LAYER_OFFSETS.append((_wih_off, _d_in, _whh_off, _bias_off))
_FC_W_OFF = _row
_row += _round8(HIDDEN_SIZE)
_FC_B_OFF = _row
_row += 8
_SLAB_ROWS = _row             # 176


# ----------------------------------------------------------------------------
# Fused kernel: 3 stacked GRU layers -> last-timestep hidden -> fc
# ----------------------------------------------------------------------------
def fused_gru_fc_kernel(T, B, x_ref, slab_ref, out_ref):
    """x_ref: (B, T, D) batch-first input.  slab_ref: packed params.  out_ref: (B, C)."""
    H = HIDDEN_SIZE
    G = 3 * H

    def layer_params(layer):
        wih_off, d_in, whh_off, b_off = _LAYER_OFFSETS[layer]
        w_ih_t = slab_ref[wih_off:wih_off + d_in, :]        # (d_in, 3H)
        w_hh_t = slab_ref[whh_off:whh_off + H, :]           # (H, 3H)
        b_gx = slab_ref[b_off:b_off + 1, :]                 # (1, 3H)  b_ih + b_hh[r,z]
        b_hn = slab_ref[b_off + 1:b_off + 2, 0:H]           # (1, H)
        return w_ih_t, w_hh_t, b_gx, b_hn

    def run_layer(seq_tbd, layer, need_seq):
        w_ih_t, w_hh_t, b_gx, b_hn = layer_params(layer)
        d_in = seq_tbd.shape[-1]
        # Input projection for ALL timesteps hoisted out of the recurrence.
        gx_all = jnp.dot(seq_tbd.reshape(T * B, d_in), w_ih_t,
                         preferred_element_type=jnp.float32) + b_gx
        gx_all = gx_all.reshape(T, B, G)                    # leading-axis time index
        # Hoist the b_hn broadcast out of the unrolled loop (JAX doesn't CSE it).
        b_hn_b = jnp.broadcast_to(b_hn, (B, H))
        h = jnp.zeros((B, H), dtype=jnp.float32)
        outs = []
        for t in range(T):                                  # fully unrolled (T static)
            gx_t = gx_all[t]                                # (B, 3H) whole-tile access
            gh = jnp.dot(h, w_hh_t, preferred_element_type=jnp.float32)  # (B, 3H)
            # PyTorch gate order [r | z | n]; r and z share one sigmoid pass.
            rz = jax.nn.sigmoid(gx_t[:, :2 * H] + gh[:, :2 * H])
            r = rz[:, :H]
            z = rz[:, H:]
            n = jnp.tanh(gx_t[:, 2 * H:] + r * (gh[:, 2 * H:] + b_hn_b))
            h = n + z * (h - n)                             # == (1 - z) * n + z * h
            if need_seq:
                outs.append(h)
        seq_out = jnp.stack(outs, axis=0) if need_seq else None   # (T, B, H)
        return seq_out, h

    # (B, T, D) batch-first -> (T, B, D) time-major, once, in-kernel (3 KB tensor).
    x_tbd = jnp.swapaxes(x_ref[...], 0, 1)

    seq, _ = run_layer(x_tbd, 0, True)
    seq, _ = run_layer(seq, 1, True)
    _, h_last = run_layer(seq, 2, False)

    # Final Linear on the last timestep of the last layer (fc weights are
    # zero-padded to the slab width, so the matmul can use the full slab rows).
    fc_w = slab_ref[_FC_W_OFF:_FC_W_OFF + H, :]             # (H, 48), cols >= C are 0
    fc_b = slab_ref[_FC_B_OFF:_FC_B_OFF + 1, :]             # (1, 48)
    logits = jnp.dot(h_last, fc_w, preferred_element_type=jnp.float32) + fc_b
    out_ref[...] = logits[:, :NUM_CLASSES]


# ----------------------------------------------------------------------------
# Parameters (PyTorch-style uniform(-1/sqrt(H), 1/sqrt(H))) + slab packing
# ----------------------------------------------------------------------------
def init_params(key):
    H = HIDDEN_SIZE
    k = 1.0 / jnp.sqrt(jnp.float32(H))
    params = {"layers": []}
    for layer in range(NUM_LAYERS):
        d_in = INPUT_SIZE if layer == 0 else HIDDEN_SIZE
        key, k1, k2, k3, k4 = jax.random.split(key, 5)
        params["layers"].append({
            "w_ih": jax.random.uniform(k1, (3 * H, d_in), jnp.float32, -k, k),
            "w_hh": jax.random.uniform(k2, (3 * H, H), jnp.float32, -k, k),
            "b_ih": jax.random.uniform(k3, (3 * H,), jnp.float32, -k, k),
            "b_hh": jax.random.uniform(k4, (3 * H,), jnp.float32, -k, k),
        })
    key, k1, k2 = jax.random.split(key, 3)
    params["fc_w"] = jax.random.uniform(k1, (NUM_CLASSES, H), jnp.float32, -k, k)
    params["fc_b"] = jax.random.uniform(k2, (NUM_CLASSES,), jnp.float32, -k, k)
    return params


def pack_params(params):
    """Pack all GRU + fc parameters into one f32 (_SLAB_ROWS, _SLAB_W) slab."""
    H = HIDDEN_SIZE
    slab = jnp.zeros((_SLAB_ROWS, _SLAB_W), jnp.float32)
    for layer, lp in enumerate(params["layers"]):
        wih_off, d_in, whh_off, b_off = _LAYER_OFFSETS[layer]
        # Fold b_ih with the r/z part of b_hh (always summed); keep b_hn separate
        # (it must be added inside r * (.) for the n gate).
        b_gx = lp["b_ih"] + jnp.concatenate(
            [lp["b_hh"][:2 * H], jnp.zeros((H,), jnp.float32)])
        slab = slab.at[wih_off:wih_off + d_in, :].set(lp["w_ih"].T)   # (d_in, 3H)
        slab = slab.at[whh_off:whh_off + H, :].set(lp["w_hh"].T)      # (H, 3H)
        slab = slab.at[b_off, :].set(b_gx)
        slab = slab.at[b_off + 1, :H].set(lp["b_hh"][2 * H:])
    slab = slab.at[_FC_W_OFF:_FC_W_OFF + H, :NUM_CLASSES].set(params["fc_w"].T)
    slab = slab.at[_FC_B_OFF, :NUM_CLASSES].set(params["fc_b"])
    return slab


# ----------------------------------------------------------------------------
# Full forward: single fused pallas_call, two VMEM inputs (x, slab)
# ----------------------------------------------------------------------------
@jax.jit
def gru_forward(x_btd, slab):
    B, T, _ = x_btd.shape
    return pl.pallas_call(
        functools.partial(fused_gru_fc_kernel, T, B),
        out_shape=jax.ShapeDtypeStruct((B, NUM_CLASSES), jnp.float32),
        in_specs=[pl.BlockSpec(memory_space=pltpu.MemorySpace.VMEM),
                  pl.BlockSpec(memory_space=pltpu.MemorySpace.VMEM)],
        out_specs=pl.BlockSpec(memory_space=pltpu.MemorySpace.VMEM),
    )(x_btd.astype(jnp.float32), slab)


# ----------------------------------------------------------------------------
# Pure-JAX reference (mirrors torch.nn.GRU + Linear semantics) for validation
# ----------------------------------------------------------------------------
def gru_reference(x, params):
    B, T, _ = x.shape
    H = HIDDEN_SIZE
    seq = x
    for lp in params["layers"]:
        h = jnp.zeros((B, H), jnp.float32)
        outs = []
        for t in range(T):
            xt = seq[:, t, :]
            gi = xt @ lp["w_ih"].T + lp["b_ih"]
            gh = h @ lp["w_hh"].T + lp["b_hh"]
            r = jax.nn.sigmoid(gi[:, :H] + gh[:, :H])
            z = jax.nn.sigmoid(gi[:, H:2 * H] + gh[:, H:2 * H])
            n = jnp.tanh(gi[:, 2 * H:] + r * gh[:, 2 * H:])
            h = (1.0 - z) * n + z * h
            outs.append(h)
        seq = jnp.stack(outs, axis=1)          # (B, T, H)
    return seq[:, -1, :] @ params["fc_w"].T + params["fc_b"]


if __name__ == "__main__":
    key = jax.random.PRNGKey(0)
    key, pkey, xkey = jax.random.split(key, 3)

    B, T = 2, 8
    x = jax.random.normal(xkey, (B, T, INPUT_SIZE), dtype=jnp.float32)

    params = init_params(pkey)
    slab = pack_params(params)

    out = gru_forward(x, slab)
    out = jax.block_until_ready(out)
    assert out.shape == (B, NUM_CLASSES), out.shape

    ref = gru_reference(x, params)
    assert jnp.allclose(out, ref, rtol=1e-4, atol=1e-4), (out, ref)

    print("KERNEL_OK")
</pallas_src>

<mosaic_0001>
module attributes {stable_mosaic.version = 11 : i64} {
  func.func @fused_gru_fc_kernel(%arg0: memref<2x8x48xf32, #tpu.memory_space<vmem>>, %arg1: memref<176x48xf32, #tpu.memory_space<vmem>>, %arg2: memref<2x2xf32, #tpu.memory_space<vmem>>) attributes {dimension_semantics = [], scalar_prefetch = 0 : i64, scratch_operands = 0 : i64, tpu.core_type = #tpu.core_type<tc>} {
    %c0 = arith.constant 0 : index
    %c0_0 = arith.constant 0 : index
    %c0_1 = arith.constant 0 : index
    %0 = vector.load %arg0[%c0, %c0_0, %c0_1] : memref<2x8x48xf32, #tpu.memory_space<vmem>>, vector<2x8x48xf32>
    %1 = tpu.transpose %0, [1, 0, 2] : vector<2x8x48xf32> -> vector<8x2x48xf32>
    %c0_2 = arith.constant 0 : index
    %c0_3 = arith.constant 0 : index
    %2 = vector.load %arg1[%c0_2, %c0_3] : memref<176x48xf32, #tpu.memory_space<vmem>>, vector<48x48xf32>
    %c48 = arith.constant 48 : index
    %c0_4 = arith.constant 0 : index
    %3 = vector.load %arg1[%c48, %c0_4] : memref<176x48xf32, #tpu.memory_space<vmem>>, vector<16x48xf32>
    %c64 = arith.constant 64 : index
    %c0_5 = arith.constant 0 : index
    %4 = vector.load %arg1[%c64, %c0_5] : memref<176x48xf32, #tpu.memory_space<vmem>>, vector<1x48xf32>
    %c65 = arith.constant 65 : index
    %c0_6 = arith.constant 0 : index
    %5 = vector.load %arg1[%c65, %c0_6] : memref<176x48xf32, #tpu.memory_space<vmem>>, vector<1x16xf32>
    %6 = vector.shape_cast %1 : vector<8x2x48xf32> to vector<16x48xf32>
    %cst = arith.constant dense<0.000000e+00> : vector<16x48xf32>
    %7 = tpu.matmul %6, %2, %cst {dimension_numbers = #tpu.dot_dimension_numbers<[1], [0], [0], [1], [0, 0, 1, 1], [], []>} : vector<16x48xf32>, vector<48x48xf32>, vector<16x48xf32> -> vector<16x48xf32>
    %8 = vector.broadcast %4 : vector<1x48xf32> to vector<16x48xf32>
    %9 = arith.addf %7, %8 : vector<16x48xf32>
    %10 = vector.shape_cast %9 : vector<16x48xf32> to vector<8x2x48xf32>
    %11 = vector.shape_cast %5 : vector<1x16xf32> to vector<1x16xf32>
    %12 = vector.broadcast %11 : vector<1x16xf32> to vector<2x16xf32>
    %cst_7 = arith.constant 0.000000e+00 : f32
    %13 = vector.broadcast %cst_7 : f32 to vector<2x16xf32>
    %14 = vector.extract_strided_slice %10 {offsets = [0, 0, 0], sizes = [1, 2, 48], strides = [1, 1, 1]} : vector<8x2x48xf32> to vector<1x2x48xf32>
    %15 = vector.shape_cast %14 : vector<1x2x48xf32> to vector<2x48xf32>
    %cst_8 = arith.constant dense<0.000000e+00> : vector<2x48xf32>
    %16 = tpu.matmul %13, %3, %cst_8 {dimension_numbers = #tpu.dot_dimension_numbers<[1], [0], [0], [1], [0, 0, 1, 1], [], []>} : vector<2x16xf32>, vector<16x48xf32>, vector<2x48xf32> -> vector<2x48xf32>
    %17 = vector.extract_strided_slice %15 {offsets = [0, 0], sizes = [2, 32], strides = [1, 1]} : vector<2x48xf32> to vector<2x32xf32>
    %18 = vector.extract_strided_slice %16 {offsets = [0, 0], sizes = [2, 32], strides = [1, 1]} : vector<2x48xf32> to vector<2x32xf32>
    %19 = arith.addf %17, %18 : vector<2x32xf32>
    %20 = arith.negf %19 : vector<2x32xf32>
    %21 = math.exp %20 : vector<2x32xf32>
    %cst_9 = arith.constant 1.000000e+00 : f32
    %22 = vector.broadcast %cst_9 : f32 to vector<2x32xf32>
    %23 = arith.addf %22, %21 : vector<2x32xf32>
    %24 = arith.divf %22, %23 : vector<2x32xf32>
    %25 = vector.extract_strided_slice %24 {offsets = [0, 0], sizes = [2, 16], strides = [1, 1]} : vector<2x32xf32> to vector<2x16xf32>
    %26 = vector.extract_strided_slice %24 {offsets = [0, 16], sizes = [2, 16], strides = [1, 1]} : vector<2x32xf32> to vector<2x16xf32>
    %27 = vector.extract_strided_slice %15 {offsets = [0, 32], sizes = [2, 16], strides = [1, 1]} : vector<2x48xf32> to vector<2x16xf32>
    %28 = vector.extract_strided_slice %16 {offsets = [0, 32], sizes = [2, 16], strides = [1, 1]} : vector<2x48xf32> to vector<2x16xf32>
    %29 = arith.addf %28, %12 : vector<2x16xf32>
    %30 = arith.mulf %25, %29 : vector<2x16xf32>
    %31 = arith.addf %27, %30 : vector<2x16xf32>
    %32 = math.tanh %31 : vector<2x16xf32>
    %33 = arith.subf %13, %32 : vector<2x16xf32>
    %34 = arith.mulf %26, %33 : vector<2x16xf32>
    %35 = arith.addf %32, %34 : vector<2x16xf32>
    %36 = vector.extract_strided_slice %10 {offsets = [1, 0, 0], sizes = [1, 2, 48], strides = [1, 1, 1]} : vector<8x2x48xf32> to vector<1x2x48xf32>
    %37 = vector.shape_cast %36 : vector<1x2x48xf32> to vector<2x48xf32>
    %cst_10 = arith.constant dense<0.000000e+00> : vector<2x48xf32>
    %38 = tpu.matmul %35, %3, %cst_10 {dimension_numbers = #tpu.dot_dimension_numbers<[1], [0], [0], [1], [0, 0, 1, 1], [], []>} : vector<2x16xf32>, vector<16x48xf32>, vector<2x48xf32> -> vector<2x48xf32>
    %39 = vector.extract_strided_slice %37 {offsets = [0, 0], sizes = [2, 32], strides = [1, 1]} : vector<2x48xf32> to vector<2x32xf32>
    %40 = vector.extract_strided_slice %38 {offsets = [0, 0], sizes = [2, 32], strides = [1, 1]} : vector<2x48xf32> to vector<2x32xf32>
    %41 = arith.addf %39, %40 : vector<2x32xf32>
    %42 = arith.negf %41 : vector<2x32xf32>
    %43 = math.exp %42 : vector<2x32xf32>
    %cst_11 = arith.constant 1.000000e+00 : f32
    %44 = vector.broadcast %cst_11 : f32 to vector<2x32xf32>
    %45 = arith.addf %44, %43 : vector<2x32xf32>
    %46 = arith.divf %44, %45 : vector<2x32xf32>
    %47 = vector.extract_strided_slice %46 {offsets = [0, 0], sizes = [2, 16], strides = [1, 1]} : vector<2x32xf32> to vector<2x16xf32>
    %48 = vector.extract_strided_slice %46 {offsets = [0, 16], sizes = [2, 16], strides = [1, 1]} : vector<2x32xf32> to vector<2x16xf32>
    %49 = vector.extract_strided_slice %37 {offsets = [0, 32], sizes = [2, 16], strides = [1, 1]} : vector<2x48xf32> to vector<2x16xf32>
    %50 = vector.extract_strided_slice %38 {offsets = [0, 32], sizes = [2, 16], strides = [1, 1]} : vector<2x48xf32> to vector<2x16xf32>
    %51 = arith.addf %50, %12 : vector<2x16xf32>
    %52 = arith.mulf %47, %51 : vector<2x16xf32>
    %53 = arith.addf %49, %52 : vector<2x16xf32>
    %54 = math.tanh %53 : vector<2x16xf32>
    %55 = arith.subf %35, %54 : vector<2x16xf32>
    %56 = arith.mulf %48, %55 : vector<2x16xf32>
    %57 = arith.addf %54, %56 : vector<2x16xf32>
    %58 = vector.extract_strided_slice %10 {offsets = [2, 0, 0], sizes = [1, 2, 48], strides = [1, 1, 1]} : vector<8x2x48xf32> to vector<1x2x48xf32>
    %59 = vector.shape_cast %58 : vector<1x2x48xf32> to vector<2x48xf32>
    %cst_12 = arith.constant dense<0.000000e+00> : vector<2x48xf32>
    %60 = tpu.matmul %57, %3, %cst_12 {dimension_numbers = #tpu.dot_dimension_numbers<[1], [0], [0], [1], [0, 0, 1, 1], [], []>} : vector<2x16xf32>, vector<16x48xf32>, vector<2x48xf32> -> vector<2x48xf32>
    %61 = vector.extract_strided_slice %59 {offsets = [0, 0], sizes = [2, 32], strides = [1, 1]} : vector<2x48xf32> to vector<2x32xf32>
    %62 = vector.extract_strided_slice %60 {offsets = [0, 0], sizes = [2, 32], strides = [1, 1]} : vector<2x48xf32> to vector<2x32xf32>
    %63 = arith.addf %61, %62 : vector<2x32xf32>
    %64 = arith.negf %63 : vector<2x32xf32>
    %65 = math.exp %64 : vector<2x32xf32>
    %cst_13 = arith.constant 1.000000e+00 : f32
    %66 = vector.broadcast %cst_13 : f32 to vector<2x32xf32>
    %67 = arith.addf %66, %65 : vector<2x32xf32>
    %68 = arith.divf %66, %67 : vector<2x32xf32>
    %69 = vector.extract_strided_slice %68 {offsets = [0, 0], sizes = [2, 16], strides = [1, 1]} : vector<2x32xf32> to vector<2x16xf32>
    %70 = vector.extract_strided_slice %68 {offsets = [0, 16], sizes = [2, 16], strides = [1, 1]} : vector<2x32xf32> to vector<2x16xf32>
    %71 = vector.extract_strided_slice %59 {offsets = [0, 32], sizes = [2, 16], strides = [1, 1]} : vector<2x48xf32> to vector<2x16xf32>
    %72 = vector.extract_strided_slice %60 {offsets = [0, 32], sizes = [2, 16], strides = [1, 1]} : vector<2x48xf32> to vector<2x16xf32>
    %73 = arith.addf %72, %12 : vector<2x16xf32>
    %74 = arith.mulf %69, %73 : vector<2x16xf32>
    %75 = arith.addf %71, %74 : vector<2x16xf32>
    %76 = math.tanh %75 : vector<2x16xf32>
    %77 = arith.subf %57, %76 : vector<2x16xf32>
    %78 = arith.mulf %70, %77 : vector<2x16xf32>
    %79 = arith.addf %76, %78 : vector<2x16xf32>
    %80 = vector.extract_strided_slice %10 {offsets = [3, 0, 0], sizes = [1, 2, 48], strides = [1, 1, 1]} : vector<8x2x48xf32> to vector<1x2x48xf32>
    %81 = vector.shape_cast %80 : vector<1x2x48xf32> to vector<2x48xf32>
    %cst_14 = arith.constant dense<0.000000e+00> : vector<2x48xf32>
    %82 = tpu.matmul %79, %3, %cst_14 {dimension_numbers = #tpu.dot_dimension_numbers<[1], [0], [0], [1], [0, 0, 1, 1], [], []>} : vector<2x16xf32>, vector<16x48xf32>, vector<2x48xf32> -> vector<2x48xf32>
    %83 = vector.extract_strided_slice %81 {offsets = [0, 0], sizes = [2, 32], strides = [1, 1]} : vector<2x48xf32> to vector<2x32xf32>
    %84 = vector.extract_strided_slice %82 {offsets = [0, 0], sizes = [2, 32], strides = [1, 1]} : vector<2x48xf32> to vector<2x32xf32>
    %85 = arith.addf %83, %84 : vector<2x32xf32>
    %86 = arith.negf %85 : vector<2x32xf32>
    %87 = math.exp %86 : vector<2x32xf32>
    %cst_15 = arith.constant 1.000000e+00 : f32
    %88 = vector.broadcast %cst_15 : f32 to vector<2x32xf32>
    %89 = arith.addf %88, %87 : vector<2x32xf32>
    %90 = arith.divf %88, %89 : vector<2x32xf32>
    %91 = vector.extract_strided_slice %90 {offsets = [0, 0], sizes = [2, 16], strides = [1, 1]} : vector<2x32xf32> to vector<2x16xf32>
    %92 = vector.extract_strided_slice %90 {offsets = [0, 16], sizes = [2, 16], strides = [1, 1]} : vector<2x32xf32> to vector<2x16xf32>
    %93 = vector.extract_strided_slice %81 {offsets = [0, 32], sizes = [2, 16], strides = [1, 1]} : vector<2x48xf32> to vector<2x16xf32>
    %94 = vector.extract_strided_slice %82 {offsets = [0, 32], sizes = [2, 16], strides = [1, 1]} : vector<2x48xf32> to vector<2x16xf32>
    %95 = arith.addf %94, %12 : vector<2x16xf32>
    %96 = arith.mulf %91, %95 : vector<2x16xf32>
    %97 = arith.addf %93, %96 : vector<2x16xf32>
    %98 = math.tanh %97 : vector<2x16xf32>
    %99 = arith.subf %79, %98 : vector<2x16xf32>
    %100 = arith.mulf %92, %99 : vector<2x16xf32>
    %101 = arith.addf %98, %100 : vector<2x16xf32>
    %102 = vector.extract_strided_slice %10 {offsets = [4, 0, 0], sizes = [1, 2, 48], strides = [1, 1, 1]} : vector<8x2x48xf32> to vector<1x2x48xf32>
    %103 = vector.shape_cast %102 : vector<1x2x48xf32> to vector<2x48xf32>
    %cst_16 = arith.constant dense<0.000000e+00> : vector<2x48xf32>
    %104 = tpu.matmul %101, %3, %cst_16 {dimension_numbers = #tpu.dot_dimension_numbers<[1], [0], [0], [1], [0, 0, 1, 1], [], []>} : vector<2x16xf32>, vector<16x48xf32>, vector<2x48xf32> -> vector<2x48xf32>
    %105 = vector.extract_strided_slice %103 {offsets = [0, 0], sizes = [2, 32], strides = [1, 1]} : vector<2x48xf32> to vector<2x32xf32>
    %106 = vector.extract_strided_slice %104 {offsets = [0, 0], sizes = [2, 32], strides = [1, 1]} : vector<2x48xf32> to vector<2x32xf32>
    %107 = arith.addf %105, %106 : vector<2x32xf32>
    %108 = arith.negf %107 : vector<2x32xf32>
    %109 = math.exp %108 : vector<2x32xf32>
    %cst_17 = arith.constant 1.000000e+00 : f32
    %110 = vector.broadcast %cst_17 : f32 to vector<2x32xf32>
    %111 = arith.addf %110, %109 : vector<2x32xf32>
    %112 = arith.divf %110, %111 : vector<2x32xf32>
    %113 = vector.extract_strided_slice %112 {offsets = [0, 0], sizes = [2, 16], strides = [1, 1]} : vector<2x32xf32> to vector<2x16xf32>
    %114 = vector.extract_strided_slice %112 {offsets = [0, 16], sizes = [2, 16], strides = [1, 1]} : vector<2x32xf32> to vector<2x16xf32>
    %115 = vector.extract_strided_slice %103 {offsets = [0, 32], sizes = [2, 16], strides = [1, 1]} : vector<2x48xf32> to vector<2x16xf32>
    %116 = vector.extract_strided_slice %104 {offsets = [0, 32], sizes = [2, 16], strides = [1, 1]} : vector<2x48xf32> to vector<2x16xf32>
    %117 = arith.addf %116, %12 : vector<2x16xf32>
    %118 = arith.mulf %113, %117 : vector<2x16xf32>
    %119 = arith.addf %115, %118 : vector<2x16xf32>
    %120 = math.tanh %119 : vector<2x16xf32>
    %121 = arith.subf %101, %120 : vector<2x16xf32>
    %122 = arith.mulf %114, %121 : vector<2x16xf32>
    %123 = arith.addf %120, %122 : vector<2x16xf32>
    %124 = vector.extract_strided_slice %10 {offsets = [5, 0, 0], sizes = [1, 2, 48], strides = [1, 1, 1]} : vector<8x2x48xf32> to vector<1x2x48xf32>
    %125 = vector.shape_cast %124 : vector<1x2x48xf32> to vector<2x48xf32>
    %cst_18 = arith.constant dense<0.000000e+00> : vector<2x48xf32>
    %126 = tpu.matmul %123, %3, %cst_18 {dimension_numbers = #tpu.dot_dimension_numbers<[1], [0], [0], [1], [0, 0, 1, 1], [], []>} : vector<2x16xf32>, vector<16x48xf32>, vector<2x48xf32> -> vector<2x48xf32>
    %127 = vector.extract_strided_slice %125 {offsets = [0, 0], sizes = [2, 32], strides = [1, 1]} : vector<2x48xf32> to vector<2x32xf32>
    %128 = vector.extract_strided_slice %126 {offsets = [0, 0], sizes = [2, 32], strides = [1, 1]} : vector<2x48xf32> to vector<2x32xf32>
    %129 = arith.addf %127, %128 : vector<2x32xf32>
    %130 = arith.negf %129 : vector<2x32xf32>
    %131 = math.exp %130 : vector<2x32xf32>
    %cst_19 = arith.constant 1.000000e+00 : f32
    %132 = vector.broadcast %cst_19 : f32 to vector<2x32xf32>
    %133 = arith.addf %132, %131 : vector<2x32xf32>
    %134 = arith.divf %132, %133 : vector<2x32xf32>
    %135 = vector.extract_strided_slice %134 {offsets = [0, 0], sizes = [2, 16], strides = [1, 1]} : vector<2x32xf32> to vector<2x16xf32>
    %136 = vector.extract_strided_slice %134 {offsets = [0, 16], sizes = [2, 16], strides = [1, 1]} : vector<2x32xf32> to vector<2x16xf32>
    %137 = vector.extract_strided_slice %125 {offsets = [0, 32], sizes = [2, 16], strides = [1, 1]} : vector<2x48xf32> to vector<2x16xf32>
    %138 = vector.extract_strided_slice %126 {offsets = [0, 32], sizes = [2, 16], strides = [1, 1]} : vector<2x48xf32> to vector<2x16xf32>
    %139 = arith.addf %138, %12 : vector<2x16xf32>
    %140 = arith.mulf %135, %139 : vector<2x16xf32>
    %141 = arith.addf %137, %140 : vector<2x16xf32>
    %142 = math.tanh %141 : vector<2x16xf32>
    %143 = arith.subf %123, %142 : vector<2x16xf32>
    %144 = arith.mulf %136, %143 : vector<2x16xf32>
    %145 = arith.addf %142, %144 : vector<2x16xf32>
    %146 = vector.extract_strided_slice %10 {offsets = [6, 0, 0], sizes = [1, 2, 48], strides = [1, 1, 1]} : vector<8x2x48xf32> to vector<1x2x48xf32>
    %147 = vector.shape_cast %146 : vector<1x2x48xf32> to vector<2x48xf32>
    %cst_20 = arith.constant dense<0.000000e+00> : vector<2x48xf32>
    %148 = tpu.matmul %145, %3, %cst_20 {dimension_numbers = #tpu.dot_dimension_numbers<[1], [0], [0], [1], [0, 0, 1, 1], [], []>} : vector<2x16xf32>, vector<16x48xf32>, vector<2x48xf32> -> vector<2x48xf32>
    %149 = vector.extract_strided_slice %147 {offsets = [0, 0], sizes = [2, 32], strides = [1, 1]} : vector<2x48xf32> to vector<2x32xf32>
    %150 = vector.extract_strided_slice %148 {offsets = [0, 0], sizes = [2, 32], strides = [1, 1]} : vector<2x48xf32> to vector<2x32xf32>
    %151 = arith.addf %149, %150 : vector<2x32xf32>
    %152 = arith.negf %151 : vector<2x32xf32>
    %153 = math.exp %152 : vector<2x32xf32>
    %cst_21 = arith.constant 1.000000e+00 : f32
    %154 = vector.broadcast %cst_21 : f32 to vector<2x32xf32>
    %155 = arith.addf %154, %153 : vector<2x32xf32>
    %156 = arith.divf %154, %155 : vector<2x32xf32>
    %157 = vector.extract_strided_slice %156 {offsets = [0, 0], sizes = [2, 16], strides = [1, 1]} : vector<2x32xf32> to vector<2x16xf32>
    %158 = vector.extract_strided_slice %156 {offsets = [0, 16], sizes = [2, 16], strides = [1, 1]} : vector<2x32xf32> to vector<2x16xf32>
    %159 = vector.extract_strided_slice %147 {offsets = [0, 32], sizes = [2, 16], strides = [1, 1]} : vector<2x48xf32> to vector<2x16xf32>
    %160 = vector.extract_strided_slice %148 {offsets = [0, 32], sizes = [2, 16], strides = [1, 1]} : vector<2x48xf32> to vector<2x16xf32>
    %161 = arith.addf %160, %12 : vector<2x16xf32>
    %162 = arith.mulf %157, %161 : vector<2x16xf32>
    %163 = arith.addf %159, %162 : vector<2x16xf32>
    %164 = math.tanh %163 : vector<2x16xf32>
    %165 = arith.subf %145, %164 : vector<2x16xf32>
    %166 = arith.mulf %158, %165 : vector<2x16xf32>
    %167 = arith.addf %164, %166 : vector<2x16xf32>
    %168 = vector.extract_strided_slice %10 {offsets = [7, 0, 0], sizes = [1, 2, 48], strides = [1, 1, 1]} : vector<8x2x48xf32> to vector<1x2x48xf32>
    %169 = vector.shape_cast %168 : vector<1x2x48xf32> to vector<2x48xf32>
    %cst_22 = arith.constant dense<0.000000e+00> : vector<2x48xf32>
    %170 = tpu.matmul %167, %3, %cst_22 {dimension_numbers = #tpu.dot_dimension_numbers<[1], [0], [0], [1], [0, 0, 1, 1], [], []>} : vector<2x16xf32>, vector<16x48xf32>, vector<2x48xf32> -> vector<2x48xf32>
    %171 = vector.extract_strided_slice %169 {offsets = [0, 0], sizes = [2, 32], strides = [1, 1]} : vector<2x48xf32> to vector<2x32xf32>
    %172 = vector.extract_strided_slice %170 {offsets = [0, 0], sizes = [2, 32], strides = [1, 1]} : vector<2x48xf32> to vector<2x32xf32>
    %173 = arith.addf %171, %172 : vector<2x32xf32>
    %174 = arith.negf %173 : vector<2x32xf32>
    %175 = math.exp %174 : vector<2x32xf32>
    %cst_23 = arith.constant 1.000000e+00 : f32
    %176 = vector.broadcast %cst_23 : f32 to vector<2x32xf32>
    %177 = arith.addf %176, %175 : vector<2x32xf32>
    %178 = arith.divf %176, %177 : vector<2x32xf32>
    %179 = vector.extract_strided_slice %178 {offsets = [0, 0], sizes = [2, 16], strides = [1, 1]} : vector<2x32xf32> to vector<2x16xf32>
    %180 = vector.extract_strided_slice %178 {offsets = [0, 16], sizes = [2, 16], strides = [1, 1]} : vector<2x32xf32> to vector<2x16xf32>
    %181 = vector.extract_strided_slice %169 {offsets = [0, 32], sizes = [2, 16], strides = [1, 1]} : vector<2x48xf32> to vector<2x16xf32>
    %182 = vector.extract_strided_slice %170 {offsets = [0, 32], sizes = [2, 16], strides = [1, 1]} : vector<2x48xf32> to vector<2x16xf32>
    %183 = arith.addf %182, %12 : vector<2x16xf32>
    %184 = arith.mulf %179, %183 : vector<2x16xf32>
    %185 = arith.addf %181, %184 : vector<2x16xf32>
    %186 = math.tanh %185 : vector<2x16xf32>
    %187 = arith.subf %167, %186 : vector<2x16xf32>
    %188 = arith.mulf %180, %187 : vector<2x16xf32>
    %189 = arith.addf %186, %188 : vector<2x16xf32>
    %190 = vector.shape_cast %35 : vector<2x16xf32> to vector<1x2x16xf32>
    %191 = vector.shape_cast %57 : vector<2x16xf32> to vector<1x2x16xf32>
    %192 = vector.shape_cast %79 : vector<2x16xf32> to vector<1x2x16xf32>
    %193 = vector.shape_cast %101 : vector<2x16xf32> to vector<1x2x16xf32>
    %194 = vector.shape_cast %123 : vector<2x16xf32> to vector<1x2x16xf32>
    %195 = vector.shape_cast %145 : vector<2x16xf32> to vector<1x2x16xf32>
    %196 = vector.shape_cast %167 : vector<2x16xf32> to vector<1x2x16xf32>
    %197 = vector.shape_cast %189 : vector<2x16xf32> to vector<1x2x16xf32>
    %198 = tpu.concatenate %190, %191, %192, %193, %194, %195, %196, %197 in 0 : vector<1x2x16xf32>, vector<1x2x16xf32>, vector<1x2x16xf32>, vector<1x2x16xf32>, vector<1x2x16xf32>, vector<1x2x16xf32>, vector<1x2x16xf32>, vector<1x2x16xf32> -> vector<8x2x16xf32>
    %c72 = arith.constant 72 : index
    %c0_24 = arith.constant 0 : index
    %199 = vector.load %arg1[%c72, %c0_24] : memref<176x48xf32, #tpu.memory_space<vmem>>, vector<16x48xf32>
    %c88 = arith.constant 88 : index
    %c0_25 = arith.constant 0 : index
    %200 = vector.load %arg1[%c88, %c0_25] : memref<176x48xf32, #tpu.memory_space<vmem>>, vector<16x48xf32>
    %c104 = arith.constant 104 : index
    %c0_26 = arith.constant 0 : index
    %201 = vector.load %arg1[%c104, %c0_26] : memref<176x48xf32, #tpu.memory_space<vmem>>, vector<1x48xf32>
    %c105 = arith.constant 105 : index
    %c0_27 = arith.constant 0 : index
    %202 = vector.load %arg1[%c105, %c0_27] : memref<176x48xf32, #tpu.memory_space<vmem>>, vector<1x16xf32>
    %203 = vector.shape_cast %198 : vector<8x2x16xf32> to vector<16x16xf32>
    %cst_28 = arith.constant dense<0.000000e+00> : vector<16x48xf32>
    %204 = tpu.matmul %203, %199, %cst_28 {dimension_numbers = #tpu.dot_dimension_numbers<[1], [0], [0], [1], [0, 0, 1, 1], [], []>} : vector<16x16xf32>, vector<16x48xf32>, vector<16x48xf32> -> vector<16x48xf32>
    %205 = vector.broadcast %201 : vector<1x48xf32> to vector<16x48xf32>
    %206 = arith.addf %204, %205 : vector<16x48xf32>
    %207 = vector.shape_cast %206 : vector<16x48xf32> to vector<8x2x48xf32>
    %208 = vector.shape_cast %202 : vector<1x16xf32> to vector<1x16xf32>
    %209 = vector.broadcast %208 : vector<1x16xf32> to vector<2x16xf32>
    %cst_29 = arith.constant 0.000000e+00 : f32
    %210 = vector.broadcast %cst_29 : f32 to vector<2x16xf32>
    %211 = vector.extract_strided_slice %207 {offsets = [0, 0, 0], sizes = [1, 2, 48], strides = [1, 1, 1]} : vector<8x2x48xf32> to vector<1x2x48xf32>
    %212 = vector.shape_cast %211 : vector<1x2x48xf32> to vector<2x48xf32>
    %cst_30 = arith.constant dense<0.000000e+00> : vector<2x48xf32>
    %213 = tpu.matmul %210, %200, %cst_30 {dimension_numbers = #tpu.dot_dimension_numbers<[1], [0], [0], [1], [0, 0, 1, 1], [], []>} : vector<2x16xf32>, vector<16x48xf32>, vector<2x48xf32> -> vector<2x48xf32>
    %214 = vector.extract_strided_slice %212 {offsets = [0, 0], sizes = [2, 32], strides = [1, 1]} : vector<2x48xf32> to vector<2x32xf32>
    %215 = vector.extract_strided_slice %213 {offsets = [0, 0], sizes = [2, 32], strides = [1, 1]} : vector<2x48xf32> to vector<2x32xf32>
    %216 = arith.addf %214, %215 : vector<2x32xf32>
    %217 = arith.negf %216 : vector<2x32xf32>
    %218 = math.exp %217 : vector<2x32xf32>
    %cst_31 = arith.constant 1.000000e+00 : f32
    %219 = vector.broadcast %cst_31 : f32 to vector<2x32xf32>
    %220 = arith.addf %219, %218 : vector<2x32xf32>
    %221 = arith.divf %219, %220 : vector<2x32xf32>
    %222 = vector.extract_strided_slice %221 {offsets = [0, 0], sizes = [2, 16], strides = [1, 1]} : vector<2x32xf32> to vector<2x16xf32>
    %223 = vector.extract_strided_slice %221 {offsets = [0, 16], sizes = [2, 16], strides = [1, 1]} : vector<2x32xf32> to vector<2x16xf32>
    %224 = vector.extract_strided_slice %212 {offsets = [0, 32], sizes = [2, 16], strides = [1, 1]} : vector<2x48xf32> to vector<2x16xf32>
    %225 = vector.extract_strided_slice %213 {offsets = [0, 32], sizes = [2, 16], strides = [1, 1]} : vector<2x48xf32> to vector<2x16xf32>
    %226 = arith.addf %225, %209 : vector<2x16xf32>
    %227 = arith.mulf %222, %226 : vector<2x16xf32>
    %228 = arith.addf %224, %227 : vector<2x16xf32>
    %229 = math.tanh %228 : vector<2x16xf32>
    %230 = arith.subf %210, %229 : vector<2x16xf32>
    %231 = arith.mulf %223, %230 : vector<2x16xf32>
    %232 = arith.addf %229, %231 : vector<2x16xf32>
    %233 = vector.extract_strided_slice %207 {offsets = [1, 0, 0], sizes = [1, 2, 48], strides = [1, 1, 1]} : vector<8x2x48xf32> to vector<1x2x48xf32>
    %234 = vector.shape_cast %233 : vector<1x2x48xf32> to vector<2x48xf32>
    %cst_32 = arith.constant dense<0.000000e+00> : vector<2x48xf32>
    %235 = tpu.matmul %232, %200, %cst_32 {dimension_numbers = #tpu.dot_dimension_numbers<[1], [0], [0], [1], [0, 0, 1, 1], [], []>} : vector<2x16xf32>, vector<16x48xf32>, vector<2x48xf32> -> vector<2x48xf32>
    %236 = vector.extract_strided_slice %234 {offsets = [0, 0], sizes = [2, 32], strides = [1, 1]} : vector<2x48xf32> to vector<2x32xf32>
    %237 = vector.extract_strided_slice %235 {offsets = [0, 0], sizes = [2, 32], strides = [1, 1]} : vector<2x48xf32> to vector<2x32xf32>
    %238 = arith.addf %236, %237 : vector<2x32xf32>
    %239 = arith.negf %238 : vector<2x32xf32>
    %240 = math.exp %239 : vector<2x32xf32>
    %cst_33 = arith.constant 1.000000e+00 : f32
    %241 = vector.broadcast %cst_33 : f32 to vector<2x32xf32>
    %242 = arith.addf %241, %240 : vector<2x32xf32>
    %243 = arith.divf %241, %242 : vector<2x32xf32>
    %244 = vector.extract_strided_slice %243 {offsets = [0, 0], sizes = [2, 16], strides = [1, 1]} : vector<2x32xf32> to vector<2x16xf32>
    %245 = vector.extract_strided_slice %243 {offsets = [0, 16], sizes = [2, 16], strides = [1, 1]} : vector<2x32xf32> to vector<2x16xf32>
    %246 = vector.extract_strided_slice %234 {offsets = [0, 32], sizes = [2, 16], strides = [1, 1]} : vector<2x48xf32> to vector<2x16xf32>
    %247 = vector.extract_strided_slice %235 {offsets = [0, 32], sizes = [2, 16], strides = [1, 1]} : vector<2x48xf32> to vector<2x16xf32>
    %248 = arith.addf %247, %209 : vector<2x16xf32>
    %249 = arith.mulf %244, %248 : vector<2x16xf32>
    %250 = arith.addf %246, %249 : vector<2x16xf32>
    %251 = math.tanh %250 : vector<2x16xf32>
    %252 = arith.subf %232, %251 : vector<2x16xf32>
    %253 = arith.mulf %245, %252 : vector<2x16xf32>
    %254 = arith.addf %251, %253 : vector<2x16xf32>
    %255 = vector.extract_strided_slice %207 {offsets = [2, 0, 0], sizes = [1, 2, 48], strides = [1, 1, 1]} : vector<8x2x48xf32> to vector<1x2x48xf32>
    %256 = vector.shape_cast %255 : vector<1x2x48xf32> to vector<2x48xf32>
    %cst_34 = arith.constant dense<0.000000e+00> : vector<2x48xf32>
    %257 = tpu.matmul %254, %200, %cst_34 {dimension_numbers = #tpu.dot_dimension_numbers<[1], [0], [0], [1], [0, 0, 1, 1], [], []>} : vector<2x16xf32>, vector<16x48xf32>, vector<2x48xf32> -> vector<2x48xf32>
    %258 = vector.extract_strided_slice %256 {offsets = [0, 0], sizes = [2, 32], strides = [1, 1]} : vector<2x48xf32> to vector<2x32xf32>
    %259 = vector.extract_strided_slice %257 {offsets = [0, 0], sizes = [2, 32], strides = [1, 1]} : vector<2x48xf32> to vector<2x32xf32>
    %260 = arith.addf %258, %259 : vector<2x32xf32>
    %261 = arith.negf %260 : vector<2x32xf32>
    %262 = math.exp %261 : vector<2x32xf32>
    %cst_35 = arith.constant 1.000000e+00 : f32
    %263 = vector.broadcast %cst_35 : f32 to vector<2x32xf32>
    %264 = arith.addf %263, %262 : vector<2x32xf32>
    %265 = arith.divf %263, %264 : vector<2x32xf32>
    %266 = vector.extract_strided_slice %265 {offsets = [0, 0], sizes = [2, 16], strides = [1, 1]} : vector<2x32xf32> to vector<2x16xf32>
    %267 = vector.extract_strided_slice %265 {offsets = [0, 16], sizes = [2, 16], strides = [1, 1]} : vector<2x32xf32> to vector<2x16xf32>
    %268 = vector.extract_strided_slice %256 {offsets = [0, 32], sizes = [2, 16], strides = [1, 1]} : vector<2x48xf32> to vector<2x16xf32>
    %269 = vector.extract_strided_slice %257 {offsets = [0, 32], sizes = [2, 16], strides = [1, 1]} : vector<2x48xf32> to vector<2x16xf32>
    %270 = arith.addf %269, %209 : vector<2x16xf32>
    %271 = arith.mulf %266, %270 : vector<2x16xf32>
    %272 = arith.addf %268, %271 : vector<2x16xf32>
    %273 = math.tanh %272 : vector<2x16xf32>
    %274 = arith.subf %254, %273 : vector<2x16xf32>
    %275 = arith.mulf %267, %274 : vector<2x16xf32>
    %276 = arith.addf %273, %275 : vector<2x16xf32>
    %277 = vector.extract_strided_slice %207 {offsets = [3, 0, 0], sizes = [1, 2, 48], strides = [1, 1, 1]} : vector<8x2x48xf32> to vector<1x2x48xf32>
    %278 = vector.shape_cast %277 : vector<1x2x48xf32> to vector<2x48xf32>
    %cst_36 = arith.constant dense<0.000000e+00> : vector<2x48xf32>
    %279 = tpu.matmul %276, %200, %cst_36 {dimension_numbers = #tpu.dot_dimension_numbers<[1], [0], [0], [1], [0, 0, 1, 1], [], []>} : vector<2x16xf32>, vector<16x48xf32>, vector<2x48xf32> -> vector<2x48xf32>
    %280 = vector.extract_strided_slice %278 {offsets = [0, 0], sizes = [2, 32], strides = [1, 1]} : vector<2x48xf32> to vector<2x32xf32>
    %281 = vector.extract_strided_slice %279 {offsets = [0, 0], sizes = [2, 32], strides = [1, 1]} : vector<2x48xf32> to vector<2x32xf32>
    %282 = arith.addf %280, %281 : vector<2x32xf32>
    %283 = arith.negf %282 : vector<2x32xf32>
    %284 = math.exp %283 : vector<2x32xf32>
    %cst_37 = arith.constant 1.000000e+00 : f32
    %285 = vector.broadcast %cst_37 : f32 to vector<2x32xf32>
    %286 = arith.addf %285, %284 : vector<2x32xf32>
    %287 = arith.divf %285, %286 : vector<2x32xf32>
    %288 = vector.extract_strided_slice %287 {offsets = [0, 0], sizes = [2, 16], strides = [1, 1]} : vector<2x32xf32> to vector<2x16xf32>
    %289 = vector.extract_strided_slice %287 {offsets = [0, 16], sizes = [2, 16], strides = [1, 1]} : vector<2x32xf32> to vector<2x16xf32>
    %290 = vector.extract_strided_slice %278 {offsets = [0, 32], sizes = [2, 16], strides = [1, 1]} : vector<2x48xf32> to vector<2x16xf32>
    %291 = vector.extract_strided_slice %279 {offsets = [0, 32], sizes = [2, 16], strides = [1, 1]} : vector<2x48xf32> to vector<2x16xf32>
    %292 = arith.addf %291, %209 : vector<2x16xf32>
    %293 = arith.mulf %288, %292 : vector<2x16xf32>
    %294 = arith.addf %290, %293 : vector<2x16xf32>
    %295 = math.tanh %294 : vector<2x16xf32>
    %296 = arith.subf %276, %295 : vector<2x16xf32>
    %297 = arith.mulf %289, %296 : vector<2x16xf32>
    %298 = arith.addf %295, %297 : vector<2x16xf32>
    %299 = vector.extract_strided_slice %207 {offsets = [4, 0, 0], sizes = [1, 2, 48], strides = [1, 1, 1]} : vector<8x2x48xf32> to vector<1x2x48xf32>
    %300 = vector.shape_cast %299 : vector<1x2x48xf32> to vector<2x48xf32>
    %cst_38 = arith.constant dense<0.000000e+00> : vector<2x48xf32>
    %301 = tpu.matmul %298, %200, %cst_38 {dimension_numbers = #tpu.dot_dimension_numbers<[1], [0], [0], [1], [0, 0, 1, 1], [], []>} : vector<2x16xf32>, vector<16x48xf32>, vector<2x48xf32> -> vector<2x48xf32>
    %302 = vector.extract_strided_slice %300 {offsets = [0, 0], sizes = [2, 32], strides = [1, 1]} : vector<2x48xf32> to vector<2x32xf32>
    %303 = vector.extract_strided_slice %301 {offsets = [0, 0], sizes = [2, 32], strides = [1, 1]} : vector<2x48xf32> to vector<2x32xf32>
    %304 = arith.addf %302, %303 : vector<2x32xf32>
    %305 = arith.negf %304 : vector<2x32xf32>
    %306 = math.exp %305 : vector<2x32xf32>
    %cst_39 = arith.constant 1.000000e+00 : f32
    %307 = vector.broadcast %cst_39 : f32 to vector<2x32xf32>
    %308 = arith.addf %307, %306 : vector<2x32xf32>
    %309 = arith.divf %307, %308 : vector<2x32xf32>
    %310 = vector.extract_strided_slice %309 {offsets = [0, 0], sizes = [2, 16], strides = [1, 1]} : vector<2x32xf32> to vector<2x16xf32>
    %311 = vector.extract_strided_slice %309 {offsets = [0, 16], sizes = [2, 16], strides = [1, 1]} : vector<2x32xf32> to vector<2x16xf32>
    %312 = vector.extract_strided_slice %300 {offsets = [0, 32], sizes = [2, 16], strides = [1, 1]} : vector<2x48xf32> to vector<2x16xf32>
    %313 = vector.extract_strided_slice %301 {offsets = [0, 32], sizes = [2, 16], strides = [1, 1]} : vector<2x48xf32> to vector<2x16xf32>
    %314 = arith.addf %313, %209 : vector<2x16xf32>
    %315 = arith.mulf %310, %314 : vector<2x16xf32>
    %316 = arith.addf %312, %315 : vector<2x16xf32>
    %317 = math.tanh %316 : vector<2x16xf32>
    %318 = arith.subf %298, %317 : vector<2x16xf32>
    %319 = arith.mulf %311, %318 : vector<2x16xf32>
    %320 = arith.addf %317, %319 : vector<2x16xf32>
    %321 = vector.extract_strided_slice %207 {offsets = [5, 0, 0], sizes = [1, 2, 48], strides = [1, 1, 1]} : vector<8x2x48xf32> to vector<1x2x48xf32>
    %322 = vector.shape_cast %321 : vector<1x2x48xf32> to vector<2x48xf32>
    %cst_40 = arith.constant dense<0.000000e+00> : vector<2x48xf32>
    %323 = tpu.matmul %320, %200, %cst_40 {dimension_numbers = #tpu.dot_dimension_numbers<[1], [0], [0], [1], [0, 0, 1, 1], [], []>} : vector<2x16xf32>, vector<16x48xf32>, vector<2x48xf32> -> vector<2x48xf32>
    %324 = vector.extract_strided_slice %322 {offsets = [0, 0], sizes = [2, 32], strides = [1, 1]} : vector<2x48xf32> to vector<2x32xf32>
    %325 = vector.extract_strided_slice %323 {offsets = [0, 0], sizes = [2, 32], strides = [1, 1]} : vector<2x48xf32> to vector<2x32xf32>
    %326 = arith.addf %324, %325 : vector<2x32xf32>
    %327 = arith.negf %326 : vector<2x32xf32>
    %328 = math.exp %327 : vector<2x32xf32>
    %cst_41 = arith.constant 1.000000e+00 : f32
    %329 = vector.broadcast %cst_41 : f32 to vector<2x32xf32>
    %330 = arith.addf %329, %328 : vector<2x32xf32>
    %331 = arith.divf %329, %330 : vector<2x32xf32>
    %332 = vector.extract_strided_slice %331 {offsets = [0, 0], sizes = [2, 16], strides = [1, 1]} : vector<2x32xf32> to vector<2x16xf32>
    %333 = vector.extract_strided_slice %331 {offsets = [0, 16], sizes = [2, 16], strides = [1, 1]} : vector<2x32xf32> to vector<2x16xf32>
    %334 = vector.extract_strided_slice %322 {offsets = [0, 32], sizes = [2, 16], strides = [1, 1]} : vector<2x48xf32> to vector<2x16xf32>
    %335 = vector.extract_strided_slice %323 {offsets = [0, 32], sizes = [2, 16], strides = [1, 1]} : vector<2x48xf32> to vector<2x16xf32>
    %336 = arith.addf %335, %209 : vector<2x16xf32>
    %337 = arith.mulf %332, %336 : vector<2x16xf32>
    %338 = arith.addf %334, %337 : vector<2x16xf32>
    %339 = math.tanh %338 : vector<2x16xf32>
    %340 = arith.subf %320, %339 : vector<2x16xf32>
    %341 = arith.mulf %333, %340 : vector<2x16xf32>
    %342 = arith.addf %339, %341 : vector<2x16xf32>
    %343 = vector.extract_strided_slice %207 {offsets = [6, 0, 0], sizes = [1, 2, 48], strides = [1, 1, 1]} : vector<8x2x48xf32> to vector<1x2x48xf32>
    %344 = vector.shape_cast %343 : vector<1x2x48xf32> to vector<2x48xf32>
    %cst_42 = arith.constant dense<0.000000e+00> : vector<2x48xf32>
    %345 = tpu.matmul %342, %200, %cst_42 {dimension_numbers = #tpu.dot_dimension_numbers<[1], [0], [0], [1], [0, 0, 1, 1], [], []>} : vector<2x16xf32>, vector<16x48xf32>, vector<2x48xf32> -> vector<2x48xf32>
    %346 = vector.extract_strided_slice %344 {offsets = [0, 0], sizes = [2, 32], strides = [1, 1]} : vector<2x48xf32> to vector<2x32xf32>
    %347 = vector.extract_strided_slice %345 {offsets = [0, 0], sizes = [2, 32], strides = [1, 1]} : vector<2x48xf32> to vector<2x32xf32>
    %348 = arith.addf %346, %347 : vector<2x32xf32>
    %349 = arith.negf %348 : vector<2x32xf32>
    %350 = math.exp %349 : vector<2x32xf32>
    %cst_43 = arith.constant 1.000000e+00 : f32
    %351 = vector.broadcast %cst_43 : f32 to vector<2x32xf32>
    %352 = arith.addf %351, %350 : vector<2x32xf32>
    %353 = arith.divf %351, %352 : vector<2x32xf32>
    %354 = vector.extract_strided_slice %353 {offsets = [0, 0], sizes = [2, 16], strides = [1, 1]} : vector<2x32xf32> to vector<2x16xf32>
    %355 = vector.extract_strided_slice %353 {offsets = [0, 16], sizes = [2, 16], strides = [1, 1]} : vector<2x32xf32> to vector<2x16xf32>
    %356 = vector.extract_strided_slice %344 {offsets = [0, 32], sizes = [2, 16], strides = [1, 1]} : vector<2x48xf32> to vector<2x16xf32>
    %357 = vector.extract_strided_slice %345 {offsets = [0, 32], sizes = [2, 16], strides = [1, 1]} : vector<2x48xf32> to vector<2x16xf32>
    %358 = arith.addf %357, %209 : vector<2x16xf32>
    %359 = arith.mulf %354, %358 : vector<2x16xf32>
    %360 = arith.addf %356, %359 : vector<2x16xf32>
    %361 = math.tanh %360 : vector<2x16xf32>
    %362 = arith.subf %342, %361 : vector<2x16xf32>
    %363 = arith.mulf %355, %362 : vector<2x16xf32>
    %364 = arith.addf %361, %363 : vector<2x16xf32>
    %365 = vector.extract_strided_slice %207 {offsets = [7, 0, 0], sizes = [1, 2, 48], strides = [1, 1, 1]} : vector<8x2x48xf32> to vector<1x2x48xf32>
    %366 = vector.shape_cast %365 : vector<1x2x48xf32> to vector<2x48xf32>
    %cst_44 = arith.constant dense<0.000000e+00> : vector<2x48xf32>
    %367 = tpu.matmul %364, %200, %cst_44 {dimension_numbers = #tpu.dot_dimension_numbers<[1], [0], [0], [1], [0, 0, 1, 1], [], []>} : vector<2x16xf32>, vector<16x48xf32>, vector<2x48xf32> -> vector<2x48xf32>
    %368 = vector.extract_strided_slice %366 {offsets = [0, 0], sizes = [2, 32], strides = [1, 1]} : vector<2x48xf32> to vector<2x32xf32>
    %369 = vector.extract_strided_slice %367 {offsets = [0, 0], sizes = [2, 32], strides = [1, 1]} : vector<2x48xf32> to vector<2x32xf32>
    %370 = arith.addf %368, %369 : vector<2x32xf32>
    %371 = arith.negf %370 : vector<2x32xf32>
    %372 = math.exp %371 : vector<2x32xf32>
    %cst_45 = arith.constant 1.000000e+00 : f32
    %373 = vector.broadcast %cst_45 : f32 to vector<2x32xf32>
    %374 = arith.addf %373, %372 : vector<2x32xf32>
    %375 = arith.divf %373, %374 : vector<2x32xf32>
    %376 = vector.extract_strided_slice %375 {offsets = [0, 0], sizes = [2, 16], strides = [1, 1]} : vector<2x32xf32> to vector<2x16xf32>
    %377 = vector.extract_strided_slice %375 {offsets = [0, 16], sizes = [2, 16], strides = [1, 1]} : vector<2x32xf32> to vector<2x16xf32>
    %378 = vector.extract_strided_slice %366 {offsets = [0, 32], sizes = [2, 16], strides = [1, 1]} : vector<2x48xf32> to vector<2x16xf32>
    %379 = vector.extract_strided_slice %367 {offsets = [0, 32], sizes = [2, 16], strides = [1, 1]} : vector<2x48xf32> to vector<2x16xf32>
    %380 = arith.addf %379, %209 : vector<2x16xf32>
    %381 = arith.mulf %376, %380 : vector<2x16xf32>
    %382 = arith.addf %378, %381 : vector<2x16xf32>
    %383 = math.tanh %382 : vector<2x16xf32>
    %384 = arith.subf %364, %383 : vector<2x16xf32>
    %385 = arith.mulf %377, %384 : vector<2x16xf32>
    %386 = arith.addf %383, %385 : vector<2x16xf32>
    %387 = vector.shape_cast %232 : vector<2x16xf32> to vector<1x2x16xf32>
    %388 = vector.shape_cast %254 : vector<2x16xf32> to vector<1x2x16xf32>
    %389 = vector.shape_cast %276 : vector<2x16xf32> to vector<1x2x16xf32>
    %390 = vector.shape_cast %298 : vector<2x16xf32> to vector<1x2x16xf32>
    %391 = vector.shape_cast %320 : vector<2x16xf32> to vector<1x2x16xf32>
    %392 = vector.shape_cast %342 : vector<2x16xf32> to vector<1x2x16xf32>
    %393 = vector.shape_cast %364 : vector<2x16xf32> to vector<1x2x16xf32>
    %394 = vector.shape_cast %386 : vector<2x16xf32> to vector<1x2x16xf32>
    %395 = tpu.concatenate %387, %388, %389, %390, %391, %392, %393, %394 in 0 : vector<1x2x16xf32>, vector<1x2x16xf32>, vector<1x2x16xf32>, vector<1x2x16xf32>, vector<1x2x16xf32>, vector<1x2x16xf32>, vector<1x2x16xf32>, vector<1x2x16xf32> -> vector<8x2x16xf32>
    %c112 = arith.constant 112 : index
    %c0_46 = arith.constant 0 : index
    %396 = vector.load %arg1[%c112, %c0_46] : memref<176x48xf32, #tpu.memory_space<vmem>>, vector<16x48xf32>
    %c128 = arith.constant 128 : index
    %c0_47 = arith.constant 0 : index
    %397 = vector.load %arg1[%c128, %c0_47] : memref<176x48xf32, #tpu.memory_space<vmem>>, vector<16x48xf32>
    %c144 = arith.constant 144 : index
    %c0_48 = arith.constant 0 : index
    %398 = vector.load %arg1[%c144, %c0_48] : memref<176x48xf32, #tpu.memory_space<vmem>>, vector<1x48xf32>
    %c145 = arith.constant 145 : index
    %c0_49 = arith.constant 0 : index
    %399 = vector.load %arg1[%c145, %c0_49] : memref<176x48xf32, #tpu.memory_space<vmem>>, vector<1x16xf32>
    %400 = vector.shape_cast %395 : vector<8x2x16xf32> to vector<16x16xf32>
    %cst_50 = arith.constant dense<0.000000e+00> : vector<16x48xf32>
    %401 = tpu.matmul %400, %396, %cst_50 {dimension_numbers = #tpu.dot_dimension_numbers<[1], [0], [0], [1], [0, 0, 1, 1], [], []>} : vector<16x16xf32>, vector<16x48xf32>, vector<16x48xf32> -> vector<16x48xf32>
    %402 = vector.broadcast %398 : vector<1x48xf32> to vector<16x48xf32>
    %403 = arith.addf %401, %402 : vector<16x48xf32>
    %404 = vector.shape_cast %403 : vector<16x48xf32> to vector<8x2x48xf32>
    %405 = vector.shape_cast %399 : vector<1x16xf32> to vector<1x16xf32>
    %406 = vector.broadcast %405 : vector<1x16xf32> to vector<2x16xf32>
    %cst_51 = arith.constant 0.000000e+00 : f32
    %407 = vector.broadcast %cst_51 : f32 to vector<2x16xf32>
    %408 = vector.extract_strided_slice %404 {offsets = [0, 0, 0], sizes = [1, 2, 48], strides = [1, 1, 1]} : vector<8x2x48xf32> to vector<1x2x48xf32>
    %409 = vector.shape_cast %408 : vector<1x2x48xf32> to vector<2x48xf32>
    %cst_52 = arith.constant dense<0.000000e+00> : vector<2x48xf32>
    %410 = tpu.matmul %407, %397, %cst_52 {dimension_numbers = #tpu.dot_dimension_numbers<[1], [0], [0], [1], [0, 0, 1, 1], [], []>} : vector<2x16xf32>, vector<16x48xf32>, vector<2x48xf32> -> vector<2x48xf32>
    %411 = vector.extract_strided_slice %409 {offsets = [0, 0], sizes = [2, 32], strides = [1, 1]} : vector<2x48xf32> to vector<2x32xf32>
    %412 = vector.extract_strided_slice %410 {offsets = [0, 0], sizes = [2, 32], strides = [1, 1]} : vector<2x48xf32> to vector<2x32xf32>
    %413 = arith.addf %411, %412 : vector<2x32xf32>
    %414 = arith.negf %413 : vector<2x32xf32>
    %415 = math.exp %414 : vector<2x32xf32>
    %cst_53 = arith.constant 1.000000e+00 : f32
    %416 = vector.broadcast %cst_53 : f32 to vector<2x32xf32>
    %417 = arith.addf %416, %415 : vector<2x32xf32>
    %418 = arith.divf %416, %417 : vector<2x32xf32>
    %419 = vector.extract_strided_slice %418 {offsets = [0, 0], sizes = [2, 16], strides = [1, 1]} : vector<2x32xf32> to vector<2x16xf32>
    %420 = vector.extract_strided_slice %418 {offsets = [0, 16], sizes = [2, 16], strides = [1, 1]} : vector<2x32xf32> to vector<2x16xf32>
    %421 = vector.extract_strided_slice %409 {offsets = [0, 32], sizes = [2, 16], strides = [1, 1]} : vector<2x48xf32> to vector<2x16xf32>
    %422 = vector.extract_strided_slice %410 {offsets = [0, 32], sizes = [2, 16], strides = [1, 1]} : vector<2x48xf32> to vector<2x16xf32>
    %423 = arith.addf %422, %406 : vector<2x16xf32>
    %424 = arith.mulf %419, %423 : vector<2x16xf32>
    %425 = arith.addf %421, %424 : vector<2x16xf32>
    %426 = math.tanh %425 : vector<2x16xf32>
    %427 = arith.subf %407, %426 : vector<2x16xf32>
    %428 = arith.mulf %420, %427 : vector<2x16xf32>
    %429 = arith.addf %426, %428 : vector<2x16xf32>
    %430 = vector.extract_strided_slice %404 {offsets = [1, 0, 0], sizes = [1, 2, 48], strides = [1, 1, 1]} : vector<8x2x48xf32> to vector<1x2x48xf32>
    %431 = vector.shape_cast %430 : vector<1x2x48xf32> to vector<2x48xf32>
    %cst_54 = arith.constant dense<0.000000e+00> : vector<2x48xf32>
    %432 = tpu.matmul %429, %397, %cst_54 {dimension_numbers = #tpu.dot_dimension_numbers<[1], [0], [0], [1], [0, 0, 1, 1], [], []>} : vector<2x16xf32>, vector<16x48xf32>, vector<2x48xf32> -> vector<2x48xf32>
    %433 = vector.extract_strided_slice %431 {offsets = [0, 0], sizes = [2, 32], strides = [1, 1]} : vector<2x48xf32> to vector<2x32xf32>
    %434 = vector.extract_strided_slice %432 {offsets = [0, 0], sizes = [2, 32], strides = [1, 1]} : vector<2x48xf32> to vector<2x32xf32>
    %435 = arith.addf %433, %434 : vector<2x32xf32>
    %436 = arith.negf %435 : vector<2x32xf32>
    %437 = math.exp %436 : vector<2x32xf32>
    %cst_55 = arith.constant 1.000000e+00 : f32
    %438 = vector.broadcast %cst_55 : f32 to vector<2x32xf32>
    %439 = arith.addf %438, %437 : vector<2x32xf32>
    %440 = arith.divf %438, %439 : vector<2x32xf32>
    %441 = vector.extract_strided_slice %440 {offsets = [0, 0], sizes = [2, 16], strides = [1, 1]} : vector<2x32xf32> to vector<2x16xf32>
    %442 = vector.extract_strided_slice %440 {offsets = [0, 16], sizes = [2, 16], strides = [1, 1]} : vector<2x32xf32> to vector<2x16xf32>
    %443 = vector.extract_strided_slice %431 {offsets = [0, 32], sizes = [2, 16], strides = [1, 1]} : vector<2x48xf32> to vector<2x16xf32>
    %444 = vector.extract_strided_slice %432 {offsets = [0, 32], sizes = [2, 16], strides = [1, 1]} : vector<2x48xf32> to vector<2x16xf32>
    %445 = arith.addf %444, %406 : vector<2x16xf32>
    %446 = arith.mulf %441, %445 : vector<2x16xf32>
    %447 = arith.addf %443, %446 : vector<2x16xf32>
    %448 = math.tanh %447 : vector<2x16xf32>
    %449 = arith.subf %429, %448 : vector<2x16xf32>
    %450 = arith.mulf %442, %449 : vector<2x16xf32>
    %451 = arith.addf %448, %450 : vector<2x16xf32>
    %452 = vector.extract_strided_slice %404 {offsets = [2, 0, 0], sizes = [1, 2, 48], strides = [1, 1, 1]} : vector<8x2x48xf32> to vector<1x2x48xf32>
    %453 = vector.shape_cast %452 : vector<1x2x48xf32> to vector<2x48xf32>
    %cst_56 = arith.constant dense<0.000000e+00> : vector<2x48xf32>
    %454 = tpu.matmul %451, %397, %cst_56 {dimension_numbers = #tpu.dot_dimension_numbers<[1], [0], [0], [1], [0, 0, 1, 1], [], []>} : vector<2x16xf32>, vector<16x48xf32>, vector<2x48xf32> -> vector<2x48xf32>
    %455 = vector.extract_strided_slice %453 {offsets = [0, 0], sizes = [2, 32], strides = [1, 1]} : vector<2x48xf32> to vector<2x32xf32>
    %456 = vector.extract_strided_slice %454 {offsets = [0, 0], sizes = [2, 32], strides = [1, 1]} : vector<2x48xf32> to vector<2x32xf32>
    %457 = arith.addf %455, %456 : vector<2x32xf32>
    %458 = arith.negf %457 : vector<2x32xf32>
    %459 = math.exp %458 : vector<2x32xf32>
    %cst_57 = arith.constant 1.000000e+00 : f32
    %460 = vector.broadcast %cst_57 : f32 to vector<2x32xf32>
    %461 = arith.addf %460, %459 : vector<2x32xf32>
    %462 = arith.divf %460, %461 : vector<2x32xf32>
    %463 = vector.extract_strided_slice %462 {offsets = [0, 0], sizes = [2, 16], strides = [1, 1]} : vector<2x32xf32> to vector<2x16xf32>
    %464 = vector.extract_strided_slice %462 {offsets = [0, 16], sizes = [2, 16], strides = [1, 1]} : vector<2x32xf32> to vector<2x16xf32>
    %465 = vector.extract_strided_slice %453 {offsets = [0, 32], sizes = [2, 16], strides = [1, 1]} : vector<2x48xf32> to vector<2x16xf32>
    %466 = vector.extract_strided_slice %454 {offsets = [0, 32], sizes = [2, 16], strides = [1, 1]} : vector<2x48xf32> to vector<2x16xf32>
    %467 = arith.addf %466, %406 : vector<2x16xf32>
    %468 = arith.mulf %463, %467 : vector<2x16xf32>
    %469 = arith.addf %465, %468 : vector<2x16xf32>
    %470 = math.tanh %469 : vector<2x16xf32>
    %471 = arith.subf %451, %470 : vector<2x16xf32>
    %472 = arith.mulf %464, %471 : vector<2x16xf32>
    %473 = arith.addf %470, %472 : vector<2x16xf32>
    %474 = vector.extract_strided_slice %404 {offsets = [3, 0, 0], sizes = [1, 2, 48], strides = [1, 1, 1]} : vector<8x2x48xf32> to vector<1x2x48xf32>
    %475 = vector.shape_cast %474 : vector<1x2x48xf32> to vector<2x48xf32>
    %cst_58 = arith.constant dense<0.000000e+00> : vector<2x48xf32>
    %476 = tpu.matmul %473, %397, %cst_58 {dimension_numbers = #tpu.dot_dimension_numbers<[1], [0], [0], [1], [0, 0, 1, 1], [], []>} : vector<2x16xf32>, vector<16x48xf32>, vector<2x48xf32> -> vector<2x48xf32>
    %477 = vector.extract_strided_slice %475 {offsets = [0, 0], sizes = [2, 32], strides = [1, 1]} : vector<2x48xf32> to vector<2x32xf32>
    %478 = vector.extract_strided_slice %476 {offsets = [0, 0], sizes = [2, 32], strides = [1, 1]} : vector<2x48xf32> to vector<2x32xf32>
    %479 = arith.addf %477, %478 : vector<2x32xf32>
    %480 = arith.negf %479 : vector<2x32xf32>
    %481 = math.exp %480 : vector<2x32xf32>
    %cst_59 = arith.constant 1.000000e+00 : f32
    %482 = vector.broadcast %cst_59 : f32 to vector<2x32xf32>
    %483 = arith.addf %482, %481 : vector<2x32xf32>
    %484 = arith.divf %482, %483 : vector<2x32xf32>
    %485 = vector.extract_strided_slice %484 {offsets = [0, 0], sizes = [2, 16], strides = [1, 1]} : vector<2x32xf32> to vector<2x16xf32>
    %486 = vector.extract_strided_slice %484 {offsets = [0, 16], sizes = [2, 16], strides = [1, 1]} : vector<2x32xf32> to vector<2x16xf32>
    %487 = vector.extract_strided_slice %475 {offsets = [0, 32], sizes = [2, 16], strides = [1, 1]} : vector<2x48xf32> to vector<2x16xf32>
    %488 = vector.extract_strided_slice %476 {offsets = [0, 32], sizes = [2, 16], strides = [1, 1]} : vector<2x48xf32> to vector<2x16xf32>
    %489 = arith.addf %488, %406 : vector<2x16xf32>
    %490 = arith.mulf %485, %489 : vector<2x16xf32>
    %491 = arith.addf %487, %490 : vector<2x16xf32>
    %492 = math.tanh %491 : vector<2x16xf32>
    %493 = arith.subf %473, %492 : vector<2x16xf32>
    %494 = arith.mulf %486, %493 : vector<2x16xf32>
    %495 = arith.addf %492, %494 : vector<2x16xf32>
    %496 = vector.extract_strided_slice %404 {offsets = [4, 0, 0], sizes = [1, 2, 48], strides = [1, 1, 1]} : vector<8x2x48xf32> to vector<1x2x48xf32>
    %497 = vector.shape_cast %496 : vector<1x2x48xf32> to vector<2x48xf32>
    %cst_60 = arith.constant dense<0.000000e+00> : vector<2x48xf32>
    %498 = tpu.matmul %495, %397, %cst_60 {dimension_numbers = #tpu.dot_dimension_numbers<[1], [0], [0], [1], [0, 0, 1, 1], [], []>} : vector<2x16xf32>, vector<16x48xf32>, vector<2x48xf32> -> vector<2x48xf32>
    %499 = vector.extract_strided_slice %497 {offsets = [0, 0], sizes = [2, 32], strides = [1, 1]} : vector<2x48xf32> to vector<2x32xf32>
    %500 = vector.extract_strided_slice %498 {offsets = [0, 0], sizes = [2, 32], strides = [1, 1]} : vector<2x48xf32> to vector<2x32xf32>
    %501 = arith.addf %499, %500 : vector<2x32xf32>
    %502 = arith.negf %501 : vector<2x32xf32>
    %503 = math.exp %502 : vector<2x32xf32>
    %cst_61 = arith.constant 1.000000e+00 : f32
    %504 = vector.broadcast %cst_61 : f32 to vector<2x32xf32>
    %505 = arith.addf %504, %503 : vector<2x32xf32>
    %506 = arith.divf %504, %505 : vector<2x32xf32>
    %507 = vector.extract_strided_slice %506 {offsets = [0, 0], sizes = [2, 16], strides = [1, 1]} : vector<2x32xf32> to vector<2x16xf32>
    %508 = vector.extract_strided_slice %506 {offsets = [0, 16], sizes = [2, 16], strides = [1, 1]} : vector<2x32xf32> to vector<2x16xf32>
    %509 = vector.extract_strided_slice %497 {offsets = [0, 32], sizes = [2, 16], strides = [1, 1]} : vector<2x48xf32> to vector<2x16xf32>
    %510 = vector.extract_strided_slice %498 {offsets = [0, 32], sizes = [2, 16], strides = [1, 1]} : vector<2x48xf32> to vector<2x16xf32>
    %511 = arith.addf %510, %406 : vector<2x16xf32>
    %512 = arith.mulf %507, %511 : vector<2x16xf32>
    %513 = arith.addf %509, %512 : vector<2x16xf32>
    %514 = math.tanh %513 : vector<2x16xf32>
    %515 = arith.subf %495, %514 : vector<2x16xf32>
    %516 = arith.mulf %508, %515 : vector<2x16xf32>
    %517 = arith.addf %514, %516 : vector<2x16xf32>
    %518 = vector.extract_strided_slice %404 {offsets = [5, 0, 0], sizes = [1, 2, 48], strides = [1, 1, 1]} : vector<8x2x48xf32> to vector<1x2x48xf32>
    %519 = vector.shape_cast %518 : vector<1x2x48xf32> to vector<2x48xf32>
    %cst_62 = arith.constant dense<0.000000e+00> : vector<2x48xf32>
    %520 = tpu.matmul %517, %397, %cst_62 {dimension_numbers = #tpu.dot_dimension_numbers<[1], [0], [0], [1], [0, 0, 1, 1], [], []>} : vector<2x16xf32>, vector<16x48xf32>, vector<2x48xf32> -> vector<2x48xf32>
    %521 = vector.extract_strided_slice %519 {offsets = [0, 0], sizes = [2, 32], strides = [1, 1]} : vector<2x48xf32> to vector<2x32xf32>
    %522 = vector.extract_strided_slice %520 {offsets = [0, 0], sizes = [2, 32], strides = [1, 1]} : vector<2x48xf32> to vector<2x32xf32>
    %523 = arith.addf %521, %522 : vector<2x32xf32>
    %524 = arith.negf %523 : vector<2x32xf32>
    %525 = math.exp %524 : vector<2x32xf32>
    %cst_63 = arith.constant 1.000000e+00 : f32
    %526 = vector.broadcast %cst_63 : f32 to vector<2x32xf32>
    %527 = arith.addf %526, %525 : vector<2x32xf32>
    %528 = arith.divf %526, %527 : vector<2x32xf32>
    %529 = vector.extract_strided_slice %528 {offsets = [0, 0], sizes = [2, 16], strides = [1, 1]} : vector<2x32xf32> to vector<2x16xf32>
    %530 = vector.extract_strided_slice %528 {offsets = [0, 16], sizes = [2, 16], strides = [1, 1]} : vector<2x32xf32> to vector<2x16xf32>
    %531 = vector.extract_strided_slice %519 {offsets = [0, 32], sizes = [2, 16], strides = [1, 1]} : vector<2x48xf32> to vector<2x16xf32>
    %532 = vector.extract_strided_slice %520 {offsets = [0, 32], sizes = [2, 16], strides = [1, 1]} : vector<2x48xf32> to vector<2x16xf32>
    %533 = arith.addf %532, %406 : vector<2x16xf32>
    %534 = arith.mulf %529, %533 : vector<2x16xf32>
    %535 = arith.addf %531, %534 : vector<2x16xf32>
    %536 = math.tanh %535 : vector<2x16xf32>
    %537 = arith.subf %517, %536 : vector<2x16xf32>
    %538 = arith.mulf %530, %537 : vector<2x16xf32>
    %539 = arith.addf %536, %538 : vector<2x16xf32>
    %540 = vector.extract_strided_slice %404 {offsets = [6, 0, 0], sizes = [1, 2, 48], strides = [1, 1, 1]} : vector<8x2x48xf32> to vector<1x2x48xf32>
    %541 = vector.shape_cast %540 : vector<1x2x48xf32> to vector<2x48xf32>
    %cst_64 = arith.constant dense<0.000000e+00> : vector<2x48xf32>
    %542 = tpu.matmul %539, %397, %cst_64 {dimension_numbers = #tpu.dot_dimension_numbers<[1], [0], [0], [1], [0, 0, 1, 1], [], []>} : vector<2x16xf32>, vector<16x48xf32>, vector<2x48xf32> -> vector<2x48xf32>
    %543 = vector.extract_strided_slice %541 {offsets = [0, 0], sizes = [2, 32], strides = [1, 1]} : vector<2x48xf32> to vector<2x32xf32>
    %544 = vector.extract_strided_slice %542 {offsets = [0, 0], sizes = [2, 32], strides = [1, 1]} : vector<2x48xf32> to vector<2x32xf32>
    %545 = arith.addf %543, %544 : vector<2x32xf32>
    %546 = arith.negf %545 : vector<2x32xf32>
    %547 = math.exp %546 : vector<2x32xf32>
    %cst_65 = arith.constant 1.000000e+00 : f32
    %548 = vector.broadcast %cst_65 : f32 to vector<2x32xf32>
    %549 = arith.addf %548, %547 : vector<2x32xf32>
    %550 = arith.divf %548, %549 : vector<2x32xf32>
    %551 = vector.extract_strided_slice %550 {offsets = [0, 0], sizes = [2, 16], strides = [1, 1]} : vector<2x32xf32> to vector<2x16xf32>
    %552 = vector.extract_strided_slice %550 {offsets = [0, 16], sizes = [2, 16], strides = [1, 1]} : vector<2x32xf32> to vector<2x16xf32>
    %553 = vector.extract_strided_slice %541 {offsets = [0, 32], sizes = [2, 16], strides = [1, 1]} : vector<2x48xf32> to vector<2x16xf32>
    %554 = vector.extract_strided_slice %542 {offsets = [0, 32], sizes = [2, 16], strides = [1, 1]} : vector<2x48xf32> to vector<2x16xf32>
    %555 = arith.addf %554, %406 : vector<2x16xf32>
    %556 = arith.mulf %551, %555 : vector<2x16xf32>
    %557 = arith.addf %553, %556 : vector<2x16xf32>
    %558 = math.tanh %557 : vector<2x16xf32>
    %559 = arith.subf %539, %558 : vector<2x16xf32>
    %560 = arith.mulf %552, %559 : vector<2x16xf32>
    %561 = arith.addf %558, %560 : vector<2x16xf32>
    %562 = vector.extract_strided_slice %404 {offsets = [7, 0, 0], sizes = [1, 2, 48], strides = [1, 1, 1]} : vector<8x2x48xf32> to vector<1x2x48xf32>
    %563 = vector.shape_cast %562 : vector<1x2x48xf32> to vector<2x48xf32>
    %cst_66 = arith.constant dense<0.000000e+00> : vector<2x48xf32>
    %564 = tpu.matmul %561, %397, %cst_66 {dimension_numbers = #tpu.dot_dimension_numbers<[1], [0], [0], [1], [0, 0, 1, 1], [], []>} : vector<2x16xf32>, vector<16x48xf32>, vector<2x48xf32> -> vector<2x48xf32>
    %565 = vector.extract_strided_slice %563 {offsets = [0, 0], sizes = [2, 32], strides = [1, 1]} : vector<2x48xf32> to vector<2x32xf32>
    %566 = vector.extract_strided_slice %564 {offsets = [0, 0], sizes = [2, 32], strides = [1, 1]} : vector<2x48xf32> to vector<2x32xf32>
    %567 = arith.addf %565, %566 : vector<2x32xf32>
    %568 = arith.negf %567 : vector<2x32xf32>
    %569 = math.exp %568 : vector<2x32xf32>
    %cst_67 = arith.constant 1.000000e+00 : f32
    %570 = vector.broadcast %cst_67 : f32 to vector<2x32xf32>
    %571 = arith.addf %570, %569 : vector<2x32xf32>
    %572 = arith.divf %570, %571 : vector<2x32xf32>
    %573 = vector.extract_strided_slice %572 {offsets = [0, 0], sizes = [2, 16], strides = [1, 1]} : vector<2x32xf32> to vector<2x16xf32>
    %574 = vector.extract_strided_slice %572 {offsets = [0, 16], sizes = [2, 16], strides = [1, 1]} : vector<2x32xf32> to vector<2x16xf32>
    %575 = vector.extract_strided_slice %563 {offsets = [0, 32], sizes = [2, 16], strides = [1, 1]} : vector<2x48xf32> to vector<2x16xf32>
    %576 = vector.extract_strided_slice %564 {offsets = [0, 32], sizes = [2, 16], strides = [1, 1]} : vector<2x48xf32> to vector<2x16xf32>
    %577 = arith.addf %576, %406 : vector<2x16xf32>
    %578 = arith.mulf %573, %577 : vector<2x16xf32>
    %579 = arith.addf %575, %578 : vector<2x16xf32>
    %580 = math.tanh %579 : vector<2x16xf32>
    %581 = arith.subf %561, %580 : vector<2x16xf32>
    %582 = arith.mulf %574, %581 : vector<2x16xf32>
    %583 = arith.addf %580, %582 : vector<2x16xf32>
    %c152 = arith.constant 152 : index
    %c0_68 = arith.constant 0 : index
    %584 = vector.load %arg1[%c152, %c0_68] : memref<176x48xf32, #tpu.memory_space<vmem>>, vector<16x48xf32>
    %c168 = arith.constant 168 : index
    %c0_69 = arith.constant 0 : index
    %585 = vector.load %arg1[%c168, %c0_69] : memref<176x48xf32, #tpu.memory_space<vmem>>, vector<1x48xf32>
    %cst_70 = arith.constant dense<0.000000e+00> : vector<2x48xf32>
    %586 = tpu.matmul %583, %584, %cst_70 {dimension_numbers = #tpu.dot_dimension_numbers<[1], [0], [0], [1], [0, 0, 1, 1], [], []>} : vector<2x16xf32>, vector<16x48xf32>, vector<2x48xf32> -> vector<2x48xf32>
    %587 = vector.broadcast %585 : vector<1x48xf32> to vector<2x48xf32>
    %588 = arith.addf %586, %587 : vector<2x48xf32>
    %589 = vector.extract_strided_slice %588 {offsets = [0, 0], sizes = [2, 2], strides = [1, 1]} : vector<2x48xf32> to vector<2x2xf32>
    %c0_71 = arith.constant 0 : index
    %c0_72 = arith.constant 0 : index
    %590 = vector.load %arg2[%c0_71, %c0_72] : memref<2x2xf32, #tpu.memory_space<vmem>>, vector<2x2xf32>
    tpu.vector_store %arg2[%c0_71, %c0_72], %589 {strides = array<i32>} : memref<2x2xf32, #tpu.memory_space<vmem>>, vector<2x2xf32>,
    return
  }
}

</mosaic_0001>

<bundles_post_ra>
// kernel: gru_forward.1
= control target key start
LH: loop header
LB: loop body
LE: loop exit
PB: predicated region body
PF: predicated region fallthrough
CT: control target
= control target key end

     0   :  { %v18_v3 = vlaneseq  ;;  %v4184_v4 = vmov 0.0|0.0   ;;  %vm4185_vm0 = vmmov 0   ;;  %v4186_v6 = vmov 0.0   ;;  %s4189_s3 = smov 32   ;;  %s4763_s0 = inlined_call_operand.vmem [shape: f32[2,8,48], index: 0, kind: input, shape index: {}]   ;;  %s4764_s1 = inlined_call_operand.vmem [shape: f32[176,48], index: 1, kind: input, shape index: {}]   ;;  %s4765_s2 = inlined_call_operand.hbm [shape: f32[2,2], index: 2, kind: output, shape index: {}]  }
   0x1   :  { %v86_v0 = vld [vmem:[%s4764_s1 + $0x30] sm:$0xff]  ;;  %v87_v1 = vld [vmem:[%s4764_s1 + $0x38] sm:$0xff]  ;;  %v80_v2 = vld [vmem:[%s4764_s1] sm:$0xff]  ;;  %3923 = vmatprep.subr.bf16.mxu1 %v4184_v4  ;;  %3726 = vmatprep.mubr.msk.f32.mxu1 %vm4185_vm0, %v4186_v6  ;;  %v4187_v14 = vmov 1983009808  }
   0x2   :  { %v4219_v5 = vpack.c.bf16 %v87_v1, %v86_v0  ;;  %v81_v7 = vld [vmem:[%s4764_s1 + $0x8] sm:$0xff]  ;;  %v82_v8 = vld [vmem:[%s4764_s1 + $0x10] sm:$0xff]  ;;  %v83_v9 = vld [vmem:[%s4764_s1 + $0x18] sm:$0xff]  ;;  %v16_v15 = vunpack.c.l.s4 %v4187_v14  ;;  %v19_v16 = vshrl.u32 %v18_v3, 7  ;;  %v4188_v23 = vmov 1934713408  }
   0x3   :  { %v3911_v10 = vpack.c.bf16 %v81_v7, %v80_v2  ;;  %v3915_v11 = vpack.c.bf16 %v83_v9, %v82_v8  ;;  %v84_v12 = vld [vmem:[%s4764_s1 + $0x20] sm:$0xff]  ;;  %v85_v17 = vld [vmem:[%s4764_s1 + $0x28] sm:$0xff]  ;;  %v47_v24 = vunpack.c.l.s4 %v4188_v23 }
   0x4   :  { %v12_v13 = vld [vmem:[%s4763_s0] sm:$0xff]  ;;  %3925 = vmatpush3.bf16.msra.mxu1 %v4219_v5  ;;  %v13_v18 = vld [vmem:[%s4763_s0 + $0x8] sm:$0xff]  ;;  %v17_v21 = vunpack.c.0.s8 %v16_v15 }
   0x5   :  { %v3560_v19 = vld [vmem:[%s4764_s1 + $0x41] ss:$0 sm:$0xff]  ;;  %3912 = vmatprep.subr.bf16.mxu0 %v3911_v10  ;;  %v14_v20 = vcombine.high %v12_v13, %v4186_v6  ;;  %v29_v22 = vcombine.high %v13_v18, %v4186_v6 }
   0x6   :  { %346 = vrot.lane.b32.xlu0 %v3560_v19, %s4189_s3 }
   0x7   :  { %7 = vsyncpa [#allocation3], 0  ;;  %3914 = vmatpush3.bf16.msra.mxu0 %v3911_v10  ;;  %3926 = vmatprep.subr.bf16.mxu1 %v4184_v4  ;;  %v3919_v25 = vpack.c.bf16 %v85_v17, %v84_v12  ;;  %v4253_v26 = vsub.s32 %v17_v21, %v19_v16  ;;  %v48_v27 = vunpack.c.0.s8 %v47_v24  ;;  %vm136_vm1 = vcmask 392192   ;;  %s4190_s0 = smov 96   ;;  %v3557_v61 = vld [vmem:[%s4764_s1 + $0x40] ss:$0 sm:$0xff] }
   0x8   :  { %3727 = vmatmul.mubr.f32.vlgmr.msra.gmra.mrb[0].mxu1 %v4186_v6  ;;  %3916 = vmatprep.subr.bf16.mxu0 %v3915_v11  ;;  %s4191_s6 = smov 112   ;;  %s4192_s7 = smov 16   ;;  %vm264_vm2 = vcmask 130048   ;;  %vm3541_vm3 = vcmask 9216  }
   0x9   :  { %3928 = vmatpush3.bf16.msra.mxu1 %v4219_v5  ;;  %3733 = vmatprep.mubr.msk.f32.mxu1 %vm4185_vm0, %v4186_v6  ;;  %v21_v28 = vrot.slane %v12_v13, %v4253_v26  ;;  %v28_v29 = vrot.slane %v14_v20, %v4253_v26  ;;  %v36_v30 = vrot.slane %v13_v18, %v4253_v26  ;;  %s4193_s11 = smov [#allocation2]  }
   0xa   :  { %v43_v31 = vrot.slane %v29_v22, %v4253_v26  ;;  %3929 = vmatprep.subr.bf16.mxu1 %v4184_v4  ;;  %v51_v32 = vsub.s32 %v48_v27, %v19_v16  ;;  %s3549_s12 = sshll.u32 %s4193_s11, 4  ;;  %s3550_s12 = int_to_ptr.vmem [resolvable:$true] %s3549_s12 }
   0xb   :  { %3918 = vmatpush3.bf16.msra.mxu0 %v3915_v11  ;;  %v44_v33 = vcombine.low %v21_v28, %v36_v30  ;;  %v45_v34 = vcombine.high %v21_v28, %v36_v30  ;;  %p4165_p1 = scmp.lt.s32.totalorder %s3550_s12, %s3550_s12 }
   0xc   :  { %3920 = vmatprep.subr.bf16.mxu0 %v3919_v25  ;;  %v60_v35 = vcombine.low %v28_v29, %v43_v31  ;;  %v61_v36 = vcombine.high %v28_v29, %v43_v31 }
   0xd   :  { %v52_v37 = vrot.slane %v44_v33, %v51_v32  ;;  %v59_v38 = vrot.slane %v45_v34, %v51_v32 }
   0xe   :  { %v68_v39 = vrot.slane %v60_v35, %v51_v32  ;;  %v75_v40 = vrot.slane %v61_v36, %v51_v32 }
   0xf   :  { %3922 = vmatpush3.bf16.msra.mxu0 %v3919_v25  ;;  %v76_v41 = vcombine.high %v52_v37, %v4186_v6  ;;  %v77_v42 = vcombine.high %v59_v38, %v4186_v6 }
  0x10   :  { %v78_v43 = vcombine.high %v68_v39, %v4186_v6  ;;  %v79_v44 = vcombine.high %v75_v40, %v4186_v6  ;;  %3932 = vmatprep.subr.bf16.mxu0 %v4184_v4 }
  0x11   :  { %v102_v45 = vcombine.low %v52_v37, %v76_v41  ;;  %v103_v46 = vcombine.low %v59_v38, %v77_v42 }
  0x12   :  { %v119_v47 = vcombine.low %v68_v39, %v78_v43  ;;  %v120_v48 = vcombine.low %v75_v40, %v79_v44 }
  0x13   :  { %v110_v49 = vrot.slane %v102_v45, %v4253_v26  ;;  %v117_v50 = vrot.slane %v103_v46, %v4253_v26 }
  0x14   :  { %v127_v51 = vrot.slane %v119_v47, %v4253_v26  ;;  %v134_v52 = vrot.slane %v120_v48, %v4253_v26 }
  0x15   :  { %v118_v53 = vcombine.low %v110_v49, %v117_v50 }
  0x16   :  { %v135_v54 = vcombine.low %v127_v51, %v134_v52 }
  0x17   :  { %3719 = vmatprep.mubr.msk.f32.mxu0 %vm136_vm1, %v118_v53 }
  0x18   :  { %3720 = vmatmul.mubr.msk.f32.vlgmr.msra.gmra.mrb[0].mxu0 %vm136_vm1, %v135_v54 }
  0x19   :  { %3934 = vmatpush3.bf16.msra.mxu0 %v4219_v5  ;;  %3747 = vmatprep.mubr.msk.f32.mxu0 %vm4185_vm0, %v4186_v6 }
  0x1a   :  { %3938 = vmatprep.subr.bf16.mxu0 %v4184_v4 }
  0x78   :  { %v4276_v55 = vpop.permute.xlu0 %346 }
  0xdb   :  { %v334_v56 = vpop.f32.mrb[0].mxu1 }
  0xdc   :  { %v349_v57 = vadd.f32 %v4276_v55, %v334_v56  ;;  %v3728_v58 = vpop.f32.mrb[1].mxu1 }
  0xde   :  { %v357_v59 = vrot.slane %v349_v57, %v4253_v26 }
  0xe0   :  { %358 = vrot.lane.b32.xlu0 %v357_v59, %s4190_s0 }
  0xeb   :  { %v3721_v60 = vpop.f32.mrb[0].mxu0 }
  0xec   :  { %v4284_v62 = vadd.f32 %v3721_v60, %v3557_v61  ;;  %v207_v63 = vpop.f32.mrb[1].mxu0 }
  0xed   :  { %v4286_v0 = vadd.f32 %v3557_v61, %v207_v63 }
  0xef   :  { %v225_v1 = vrot.slane %v4286_v0, %v4253_v26  ;;  %v218_v49 = vcombine.high %v4286_v0, %v4286_v0 }
  0xf1   :  { %v338_v2 = vadd.f32 %v334_v56, %v225_v1  ;;  %v233_v27 = vcombine.high %v225_v1, %v225_v1  ;;  %v232_v50 = vrot.slane %v218_v49, %v4253_v26 }
  0xf3   :  { %v3561_v3 = vmul.f32 -1.442695, %v338_v2 }
  0xf5   :  { %4016 = vpow2.f32 %v3561_v3 }
  0xff   :  { %v4017_v7 = vpop.eup %4016 }
 0x100   :  { %v342_v8 = vadd.f32 1.0, %v4017_v7 }
 0x102   :  { %4018 = vrcp.f32 %v342_v8 }
 0x10c   :  { %v4019_v9 = vpop.eup %4018 }
 0x152   :  { %v359_v10 = vpop.permute.xlu0 %358 }
 0x153   :  { %v361_v11 = vmul.f32 %v4019_v9, %v359_v10 }
 0x155   :  { %363 = vrot.lane.b32.xlu1 %v361_v11, %s4189_s3 }
 0x1c7   :  { %v364_v12 = vpop.permute.xlu1 %363 }
 0x1c8   :  { %v366_v13 = vadd.f32 %v364_v12, %v225_v1 }
 0x1ca   :  { %4020 = vtanh.f32 %v366_v13  ;;  %v234_v13 = vcombine.high %v232_v50, %v232_v50 }
 0x1d4   :  { %v4021_v14 = vpop.eup %4020 }
 0x1d5   :  { %v368_v15 = vsub.f32 0.0, %v4021_v14 }
 0x1d7   :  { %370 = vrot.lane.b32.xlu1 %v368_v15, %s4191_s6 }
 0x249   :  { %v371_v16 = vpop.permute.xlu1 %370 }
 0x24a   :  { %v373_v17 = vmul.f32 %v4019_v9, %v371_v16 }
 0x24c   :  { %375 = vrot.lane.b32.xlu0 %v373_v17, %s4192_s7 }
 0x2be   :  { %v376_v18 = vpop.permute.xlu0 %375 }
 0x2bf   :  { %v4293_v19 = vadd.f32 %v4021_v14, %v376_v18 }
 0x2c1   :  { %v386_v20 = vrot.slane %v4293_v19, %v4253_v26 }
 0x2c3   :  { %387 = vrot.lane.b32.xlu1 %v386_v20, %s4190_s0 }
 0x335   :  { %v388_v21 = vpop.permute.xlu1 %387 }
 0x336   :  { %3734 = vmatmul.mubr.msk.f32.vlgmr.msra.gmra.mrb[2].mxu1 %vm264_vm2, %v388_v21 }
 0x337   :  { %3931 = vmatpush3.bf16.msra.mxu1 %v4219_v5  ;;  %3740 = vmatprep.mubr.msk.f32.mxu1 %vm4185_vm0, %v4186_v6 }
 0x338   :  { %3935 = vmatprep.subr.bf16.mxu1 %v4184_v4 }
 0x409   :  { %v457_v22 = vpop.f32.mrb[2].mxu1 }
 0x40a   :  { %v468_v23 = vadd.f32 %v457_v22, %v4276_v55  ;;  %v3735_v24 = vpop.f32.mrb[3].mxu1  ;;  %v461_v28 = vadd.f32 %v457_v22, %v233_v27 }
 0x40c   :  { %v476_v25 = vrot.slane %v468_v23, %v4253_v26  ;;  %v3563_v29 = vmul.f32 -1.442695, %v461_v28 }
 0x40e   :  { %477 = vrot.lane.b32.xlu0 %v476_v25, %s4190_s0  ;;  %4022 = vpow2.f32 %v3563_v29 }
 0x418   :  { %v4023_v30 = vpop.eup %4022 }
 0x419   :  { %v465_v31 = vadd.f32 1.0, %v4023_v30 }
 0x41b   :  { %4024 = vrcp.f32 %v465_v31 }
 0x425   :  { %v4025_v32 = vpop.eup %4024 }
 0x480   :  { %v478_v33 = vpop.permute.xlu0 %477 }
 0x481   :  { %v480_v34 = vmul.f32 %v4025_v32, %v478_v33 }
 0x483   :  { %482 = vrot.lane.b32.xlu1 %v480_v34, %s4189_s3 }
 0x4f5   :  { %v483_v35 = vpop.permute.xlu1 %482 }
 0x4f6   :  { %v485_v36 = vadd.f32 %v483_v35, %v233_v27 }
 0x4f8   :  { %4026 = vtanh.f32 %v485_v36 }
 0x502   :  { %v4027_v37 = vpop.eup %4026 }
 0x503   :  { %v487_v38 = vsub.f32 %v4293_v19, %v4027_v37 }
 0x505   :  { %489 = vrot.lane.b32.xlu0 %v487_v38, %s4191_s6 }
 0x577   :  { %v490_v39 = vpop.permute.xlu0 %489 }
 0x578   :  { %v492_v40 = vmul.f32 %v4025_v32, %v490_v39 }
 0x57a   :  { %494 = vrot.lane.b32.xlu1 %v492_v40, %s4192_s7 }
 0x5ec   :  { %v495_v41 = vpop.permute.xlu1 %494 }
 0x5ed   :  { %v4310_v42 = vadd.f32 %v4027_v37, %v495_v41  ;;  %v242_v37 = vrot.slane %v4284_v62, %v4253_v26 }
 0x5ef   :  { %v505_v43 = vrot.slane %v4310_v42, %v4253_v26 }
 0x5f1   :  { %506 = vrot.lane.b32.xlu0 %v505_v43, %s4190_s0 }
 0x663   :  { %v507_v44 = vpop.permute.xlu0 %506 }
 0x664   :  { %3741 = vmatmul.mubr.msk.f32.vlgmr.msra.gmra.mrb[4].mxu1 %vm264_vm2, %v507_v44 }
 0x665   :  { %3937 = vmatpush3.bf16.msra.mxu1 %v4219_v5  ;;  %3754 = vmatprep.mubr.msk.f32.mxu1 %vm4185_vm0, %v4186_v6 }
 0x666   :  { %3941 = vmatprep.subr.bf16.mxu1 %v4184_v4 }
 0x737   :  { %v576_v45 = vpop.f32.mrb[4].mxu1 }
 0x738   :  { %v587_v46 = vadd.f32 %v576_v45, %v4276_v55  ;;  %v3742_v47 = vpop.f32.mrb[5].mxu1  ;;  %v580_v51 = vadd.f32 %v576_v45, %v232_v50 }
 0x73a   :  { %v595_v48 = vrot.slane %v587_v46, %v4253_v26  ;;  %v3565_v52 = vmul.f32 -1.442695, %v580_v51 }
 0x73c   :  { %596 = vrot.lane.b32.xlu1 %v595_v48, %s4190_s0  ;;  %4028 = vpow2.f32 %v3565_v52 }
 0x746   :  { %v4029_v53 = vpop.eup %4028 }
 0x747   :  { %v584_v54 = vadd.f32 1.0, %v4029_v53 }
 0x749   :  { %4030 = vrcp.f32 %v584_v54 }
 0x753   :  { %v4031_v56 = vpop.eup %4030 }
 0x7ae   :  { %v597_v57 = vpop.permute.xlu1 %596 }
 0x7af   :  { %v599_v58 = vmul.f32 %v4031_v56, %v597_v57 }
 0x7b1   :  { %601 = vrot.lane.b32.xlu0 %v599_v58, %s4189_s3 }
 0x823   :  { %v602_v59 = vpop.permute.xlu0 %601 }
 0x824   :  { %v604_v60 = vadd.f32 %v602_v59, %v232_v50 }
 0x826   :  { %4032 = vtanh.f32 %v604_v60 }
 0x830   :  { %v4033_v61 = vpop.eup %4032 }
 0x831   :  { %v606_v63 = vsub.f32 %v4310_v42, %v4033_v61 }
 0x833   :  { %608 = vrot.lane.b32.xlu1 %v606_v63, %s4191_s6 }
 0x8a5   :  { %v609_v0 = vpop.permute.xlu1 %608 }
 0x8a6   :  { %v611_v1 = vmul.f32 %v4031_v56, %v609_v0 }
 0x8a8   :  { %613 = vrot.lane.b32.xlu0 %v611_v1, %s4192_s7 }
 0x91a   :  { %v614_v2 = vpop.permute.xlu0 %613 }
 0x91b   :  { %v4330_v3 = vadd.f32 %v4033_v61, %v614_v2  ;;  %v250_v61 = vcombine.high %v242_v37, %v242_v37 }
 0x91d   :  { %v624_v7 = vrot.slane %v4330_v3, %v4253_v26 }
 0x91f   :  { %625 = vrot.lane.b32.xlu1 %v624_v7, %s4190_s0 }
 0x991   :  { %v626_v8 = vpop.permute.xlu1 %625 }
 0x992   :  { %3748 = vmatmul.mubr.msk.f32.vlgmr.msra.gmra.mrb[2].mxu0 %vm264_vm2, %v626_v8 }
 0x993   :  { %3940 = vmatpush3.bf16.msra.mxu0 %v4219_v5  ;;  %3761 = vmatprep.mubr.msk.f32.mxu0 %vm4185_vm0, %v4186_v6 }
 0x994   :  { %3944 = vmatprep.subr.bf16.mxu0 %v4184_v4 }
 0xa65   :  { %v695_v9 = vpop.f32.mrb[2].mxu0 }
 0xa66   :  { %v706_v10 = vadd.f32 %v695_v9, %v4276_v55  ;;  %v3749_v11 = vpop.f32.mrb[3].mxu0  ;;  %v699_v14 = vadd.f32 %v695_v9, %v234_v13 }
 0xa68   :  { %v714_v12 = vrot.slane %v706_v10, %v4253_v26  ;;  %v3567_v15 = vmul.f32 -1.442695, %v699_v14 }
 0xa6a   :  { %715 = vrot.lane.b32.xlu0 %v714_v12, %s4190_s0  ;;  %4034 = vpow2.f32 %v3567_v15 }
 0xa74   :  { %v4035_v16 = vpop.eup %4034 }
 0xa75   :  { %v703_v17 = vadd.f32 1.0, %v4035_v16 }
 0xa77   :  { %4036 = vrcp.f32 %v703_v17 }
 0xa81   :  { %v4037_v18 = vpop.eup %4036 }
 0xadc   :  { %v716_v20 = vpop.permute.xlu0 %715 }
 0xadd   :  { %v718_v21 = vmul.f32 %v4037_v18, %v716_v20 }
 0xadf   :  { %720 = vrot.lane.b32.xlu1 %v718_v21, %s4189_s3 }
 0xb51   :  { %v721_v22 = vpop.permute.xlu1 %720 }
 0xb52   :  { %v723_v23 = vadd.f32 %v721_v22, %v234_v13 }
 0xb54   :  { %4038 = vtanh.f32 %v723_v23 }
 0xb5e   :  { %v4039_v24 = vpop.eup %4038 }
 0xb5f   :  { %v725_v25 = vsub.f32 %v4330_v3, %v4039_v24 }
 0xb61   :  { %727 = vrot.lane.b32.xlu0 %v725_v25, %s4191_s6 }
 0xbd3   :  { %v728_v27 = vpop.permute.xlu0 %727 }
 0xbd4   :  { %v730_v28 = vmul.f32 %v4037_v18, %v728_v27 }
 0xbd6   :  { %732 = vrot.lane.b32.xlu1 %v730_v28, %s4192_s7 }
 0xc48   :  { %v733_v29 = vpop.permute.xlu1 %732 }
 0xc49   :  { %v4347_v30 = vadd.f32 %v4039_v24, %v733_v29  ;;  %v235_v24 = vcombine.high %v4284_v62, %v4284_v62 }
 0xc4b   :  { %v743_v31 = vrot.slane %v4347_v30, %v4253_v26  ;;  %v249_v25 = vrot.slane %v235_v24, %v4253_v26 }
 0xc4d   :  { %744 = vrot.lane.b32.xlu0 %v743_v31, %s4190_s0 }
 0xcbf   :  { %v745_v32 = vpop.permute.xlu0 %744 }
 0xcc0   :  { %3755 = vmatmul.mubr.msk.f32.vlgmr.msra.gmra.mrb[6].mxu1 %vm264_vm2, %v745_v32 }
 0xcc1   :  { %3943 = vmatpush3.bf16.msra.mxu1 %v4219_v5  ;;  %3768 = vmatprep.mubr.msk.f32.mxu1 %vm4185_vm0, %v4186_v6 }
 0xd93   :  { %v814_v33 = vpop.f32.mrb[6].mxu1 }
 0xd94   :  { %v825_v34 = vadd.f32 %v814_v33, %v4276_v55  ;;  %v3756_v35 = vpop.f32.mrb[7].mxu1  ;;  %v818_v38 = vadd.f32 %v814_v33, %v242_v37 }
 0xd96   :  { %v833_v36 = vrot.slane %v825_v34, %v4253_v26  ;;  %v3569_v39 = vmul.f32 -1.442695, %v818_v38 }
 0xd98   :  { %834 = vrot.lane.b32.xlu1 %v833_v36, %s4190_s0  ;;  %4040 = vpow2.f32 %v3569_v39 }
 0xda2   :  { %v4041_v40 = vpop.eup %4040 }
 0xda3   :  { %v822_v41 = vadd.f32 1.0, %v4041_v40 }
 0xda5   :  { %4042 = vrcp.f32 %v822_v41 }
 0xdaf   :  { %v4043_v43 = vpop.eup %4042 }
 0xe0a   :  { %v835_v44 = vpop.permute.xlu1 %834 }
 0xe0b   :  { %v837_v45 = vmul.f32 %v4043_v43, %v835_v44 }
 0xe0d   :  { %839 = vrot.lane.b32.xlu0 %v837_v45, %s4189_s3 }
 0xe7f   :  { %v840_v46 = vpop.permute.xlu0 %839 }
 0xe80   :  { %v842_v47 = vadd.f32 %v840_v46, %v242_v37 }
 0xe82   :  { %4044 = vtanh.f32 %v842_v47 }
 0xe8c   :  { %v4045_v48 = vpop.eup %4044 }
 0xe8d   :  { %v844_v49 = vsub.f32 %v4347_v30, %v4045_v48 }
 0xe8f   :  { %846 = vrot.lane.b32.xlu1 %v844_v49, %s4191_s6  ;;  %v251_v49 = vcombine.high %v249_v25, %v249_v25 }
 0xf01   :  { %v847_v50 = vpop.permute.xlu1 %846 }
 0xf02   :  { %v849_v51 = vmul.f32 %v4043_v43, %v847_v50 }
 0xf04   :  { %851 = vrot.lane.b32.xlu0 %v849_v51, %s4192_s7 }
 0xf76   :  { %v852_v52 = vpop.permute.xlu0 %851 }
 0xf77   :  { %v4365_v53 = vadd.f32 %v4045_v48, %v852_v52 }
 0xf79   :  { %v862_v54 = vrot.slane %v4365_v53, %v4253_v26 }
 0xf7b   :  { %863 = vrot.lane.b32.xlu1 %v862_v54, %s4190_s0 }
 0xfed   :  { %v864_v56 = vpop.permute.xlu1 %863 }
 0xfee   :  { %3762 = vmatmul.mubr.msk.f32.vlgmr.msra.gmra.mrb[4].mxu0 %vm264_vm2, %v864_v56 }
 0xfef   :  { %3946 = vmatpush3.bf16.msra.mxu0 %v4219_v5  ;;  %3775 = vmatprep.mubr.msk.f32.mxu0 %vm4185_vm0, %v4186_v6 }
 0xff0   :  { %3951 = vmatprep.subr.bf16.mxu0 %v4184_v4 }
0x10c1   :  { %v933_v57 = vpop.f32.mrb[4].mxu0 }
0x10c2   :  { %v944_v58 = vadd.f32 %v933_v57, %v4276_v55  ;;  %v3763_v59 = vpop.f32.mrb[5].mxu0  ;;  %v937_v63 = vadd.f32 %v933_v57, %v250_v61 }
0x10c4   :  { %v952_v60 = vrot.slane %v944_v58, %v4253_v26  ;;  %v3571_v0 = vmul.f32 -1.442695, %v937_v63 }
0x10c6   :  { %953 = vrot.lane.b32.xlu0 %v952_v60, %s4190_s0  ;;  %4046 = vpow2.f32 %v3571_v0 }
0x10d0   :  { %v4047_v1 = vpop.eup %4046 }
0x10d1   :  { %v941_v2 = vadd.f32 1.0, %v4047_v1 }
0x10d3   :  { %4048 = vrcp.f32 %v941_v2 }
0x10dd   :  { %v4049_v5 = vpop.eup %4048 }
0x1138   :  { %v954_v7 = vpop.permute.xlu0 %953 }
0x1139   :  { %v956_v8 = vmul.f32 %v4049_v5, %v954_v7  ;;  %v1214_v7 = vld [vmem:[%s4764_s1 + $0x58] sm:$0xff] }
0x113b   :  { %958 = vrot.lane.b32.xlu1 %v956_v8, %s4189_s3 }
0x11ad   :  { %v959_v9 = vpop.permute.xlu1 %958 }
0x11ae   :  { %v961_v10 = vadd.f32 %v959_v9, %v250_v61  ;;  %v1223_v61 = vcombine.low %v4293_v19, %v4310_v42  ;;  %v1212_v19 = vld [vmem:[%s4764_s1 + $0x48] sm:$0xff] }
0x11b0   :  { %4050 = vtanh.f32 %v961_v10  ;;  %v1231_v2 = vrot.slane %v1223_v61, %v4253_v26 }
0x11ba   :  { %v4051_v11 = vpop.eup %4050 }
0x11bb   :  { %v963_v12 = vsub.f32 %v4365_v53, %v4051_v11 }
0x11bd   :  { %965 = vrot.lane.b32.xlu0 %v963_v12, %s4191_s6  ;;  %v3579_v12 = vld [vmem:[%s4764_s1 + $0x69] ss:$0 sm:$0xff] }
0x122f   :  { %v966_v13 = vpop.permute.xlu0 %965 }
0x1230   :  { %v968_v14 = vmul.f32 %v4049_v5, %v966_v13 }
0x1232   :  { %970 = vrot.lane.b32.xlu1 %v968_v14, %s4192_s7 }
0x12a4   :  { %v971_v15 = vpop.permute.xlu1 %970 }
0x12a5   :  { %v4382_v16 = vadd.f32 %v4051_v11, %v971_v15 }
0x12a7   :  { %v981_v17 = vrot.slane %v4382_v16, %v4253_v26  ;;  %v1240_v14 = vcombine.low %v4365_v53, %v4382_v16 }
0x12a9   :  { %982 = vrot.lane.b32.xlu0 %v981_v17, %s4190_s0 }
0x131b   :  { %v983_v18 = vpop.permute.xlu0 %982 }
0x131c   :  { %3769 = vmatmul.mubr.msk.f32.vlgmr.msra.gmra.mrb[8].mxu1 %vm264_vm2, %v983_v18 }
0x13ef   :  { %v1052_v20 = vpop.f32.mrb[8].mxu1 }
0x13f0   :  { %v1063_v21 = vadd.f32 %v1052_v20, %v4276_v55  ;;  %v3770_v22 = vpop.f32.mrb[9].mxu1  ;;  %v1056_v27 = vadd.f32 %v1052_v20, %v249_v25  ;;  %v1248_v20 = vrot.slane %v1240_v14, %v4253_v26 }
0x13f2   :  { %v1071_v23 = vrot.slane %v1063_v21, %v4253_v26  ;;  %v3573_v28 = vmul.f32 -1.442695, %v1056_v27 }
0x13f4   :  { %1072 = vrot.lane.b32.xlu1 %v1071_v23, %s4190_s0  ;;  %4052 = vpow2.f32 %v3573_v28 }
0x13fe   :  { %v4053_v29 = vpop.eup %4052 }
0x13ff   :  { %v1060_v31 = vadd.f32 1.0, %v4053_v29 }
0x1401   :  { %4054 = vrcp.f32 %v1060_v31 }
0x140b   :  { %v4055_v32 = vpop.eup %4054 }
0x1466   :  { %v1073_v33 = vpop.permute.xlu1 %1072 }
0x1467   :  { %v1075_v34 = vmul.f32 %v4055_v32, %v1073_v33 }
0x1469   :  { %1077 = vrot.lane.b32.xlu0 %v1075_v34, %s4189_s3 }
0x14db   :  { %v1078_v35 = vpop.permute.xlu0 %1077 }
0x14dc   :  { %v1080_v36 = vadd.f32 %v1078_v35, %v249_v25 }
0x14de   :  { %4056 = vtanh.f32 %v1080_v36 }
0x14e8   :  { %v4057_v37 = vpop.eup %4056 }
0x14e9   :  { %v1082_v38 = vsub.f32 %v4382_v16, %v4057_v37  ;;  %v3576_v16 = vld [vmem:[%s4764_s1 + $0x68] ss:$0 sm:$0xff] }
0x14eb   :  { %1084 = vrot.lane.b32.xlu1 %v1082_v38, %s4191_s6 }
0x155d   :  { %v1085_v62 = vpop.permute.xlu1 %1084 }
0x155e   :  { %v1087_v39 = vmul.f32 %v4055_v32, %v1085_v62 }
0x1560   :  { %1089 = vrot.lane.b32.xlu0 %v1087_v39, %s4192_s7 }
0x15d2   :  { %v1090_v40 = vpop.permute.xlu0 %1089 }
0x15d3   :  { %v1092_v41 = vadd.f32 %v4057_v37, %v1090_v40 }
0x15d5   :  { %v1100_v43 = vrot.slane %v1092_v41, %v4253_v26 }
0x15d7   :  { %1101 = vrot.lane.b32.xlu1 %v1100_v43, %s4190_s0 }
0x1649   :  { %v1102_v44 = vpop.permute.xlu1 %1101 }
0x164a   :  { %3776 = vmatmul.mubr.msk.f32.vlgmr.msra.gmra.mrb[6].mxu0 %vm264_vm2, %v1102_v44 }
0x164b   :  { %3789 = vmatprep.mubr.msk.f32.mxu0 %vm4185_vm0, %v4186_v6 }
0x171d   :  { %v1171_v45 = vpop.f32.mrb[6].mxu0 }
0x171e   :  { %v1182_v46 = vadd.f32 %v1171_v45, %v4276_v55  ;;  %v3777_v47 = vpop.f32.mrb[7].mxu0  ;;  %v1175_v50 = vadd.f32 %v1171_v45, %v251_v49  ;;  %v1224_v55 = vcombine.low %v4330_v3, %v4347_v30  ;;  %v1215_v3 = vld [vmem:[%s4764_s1 + $0x60] sm:$0xff]  ;;  %v1213_v30 = vld [vmem:[%s4764_s1 + $0x50] sm:$0xff] }
0x171f   :  { %v4424_v42 = vpack.c.bf16 %v1215_v3, %v1214_v7  ;;  %v3947_v9 = vpack.c.bf16 %v1213_v30, %v1212_v19 }
0x1720   :  { %v1190_v48 = vrot.slane %v1182_v46, %v4253_v26  ;;  %v3575_v51 = vmul.f32 -1.442695, %v1175_v50  ;;  %v1238_v1 = vrot.slane %v1224_v55, %v4253_v26 }
0x1721   :  { %3953 = vmatpush3.bf16.msra.mxu0 %v4424_v42  ;;  %3948 = vmatprep.subr.bf16.mxu1 %v3947_v9 }
0x1722   :  { %1191 = vrot.lane.b32.xlu0 %v1190_v48, %s4190_s0  ;;  %4058 = vpow2.f32 %v3575_v51  ;;  %v1239_v5 = vcombine.low %v1231_v2, %v1238_v1  ;;  %3957 = vmatprep.subr.bf16.mxu0 %v4184_v4 }
0x1723   :  { %3950 = vmatpush3.bf16.msra.mxu1 %v3947_v9 }
0x1724   :  { %3790 = vmatmul.mubr.f32.vlgmr.msra.gmra.mrb[8].mxu0 %v4186_v6  ;;  %3954 = vmatprep.subr.bf16.mxu1 %v4184_v4 }
0x1725   :  { %3959 = vmatpush3.bf16.msra.mxu0 %v4424_v42  ;;  %3803 = vmatprep.mubr.msk.f32.mxu0 %vm4185_vm0, %v4186_v6 }
0x1726   :  { %3963 = vmatprep.subr.bf16.mxu0 %v4184_v4 }
0x172c   :  { %v4059_v52 = vpop.eup %4058 }
0x172d   :  { %v1179_v54 = vadd.f32 1.0, %v4059_v52 }
0x172f   :  { %4060 = vrcp.f32 %v1179_v54 }
0x1739   :  { %v4061_v56 = vpop.eup %4060 }
0x1794   :  { %v1192_v57 = vpop.permute.xlu0 %1191 }
0x1795   :  { %v1194_v58 = vmul.f32 %v4061_v56, %v1192_v57 }
0x1797   :  { %1196 = vrot.lane.b32.xlu1 %v1194_v58, %s4189_s3 }
0x17f7   :  { %v1454_v22 = vpop.f32.mrb[8].mxu0 }
0x17f8   :  { %v3791_v23 = vpop.f32.mrb[9].mxu0 }
0x1809   :  { %v1197_v59 = vpop.permute.xlu1 %1196 }
0x180a   :  { %v1199_v60 = vadd.f32 %v1197_v59, %v251_v49 }
0x180c   :  { %4062 = vtanh.f32 %v1199_v60 }
0x1816   :  { %v4063_v63 = vpop.eup %4062 }
0x1817   :  { %v1201_v0 = vsub.f32 %v1092_v41, %v4063_v63 }
0x1819   :  { %1203 = vrot.lane.b32.xlu0 %v1201_v0, %s4191_s6 }
0x181d   :  { %1257 = vrot.lane.b32.xlu0 %v1239_v5, %s4190_s0 }
0x1821   :  { %1466 = vrot.lane.b32.xlu0 %v3579_v12, %s4189_s3 }
0x188b   :  { %v1204_v8 = vpop.permute.xlu0 %1203 }
0x188c   :  { %v1206_v10 = vmul.f32 %v4061_v56, %v1204_v8 }
0x188e   :  { %1208 = vrot.lane.b32.xlu1 %v1206_v10, %s4192_s7 }
0x188f   :  { %v1258_v11 = vpop.permute.xlu0 %1257 }
0x1890   :  { %3782 = vmatprep.mubr.msk.f32.mxu1 %vm264_vm2, %v1258_v11 }
0x1893   :  { %v4448_v24 = vpop.permute.xlu0 %1466 }
0x1894   :  { %v1469_v25 = vadd.f32 %v4448_v24, %v1454_v22 }
0x1896   :  { %v1477_v27 = vrot.slane %v1469_v25, %v4253_v26 }
0x1900   :  { %v1209_v13 = vpop.permute.xlu1 %1208 }
0x1901   :  { %v1211_v15 = vadd.f32 %v4063_v63, %v1209_v13 }
0x1903   :  { %v1241_v17 = vcombine.low %v1092_v41, %v1211_v15 }
0x1905   :  { %v1255_v18 = vrot.slane %v1241_v17, %v4253_v26 }
0x1907   :  { %v1256_v21 = vcombine.low %v1248_v20, %v1255_v18 }
0x1909   :  { %1259 = vrot.lane.b32.xlu1 %v1256_v21, %s4190_s0 }
0x190d   :  { %1478 = vrot.lane.b32.xlu1 %v1477_v27, %s4190_s0 }
0x197b   :  { %v1260_v53 = vpop.permute.xlu1 %1259 }
0x197c   :  { %3783 = vmatmul.mubr.msk.f32.vlgmr.msra.gmra.mrb[10].mxu1 %vm264_vm2, %v1260_v53 }
0x197d   :  { %3956 = vmatpush3.bf16.msra.mxu1 %v4424_v42  ;;  %3796 = vmatprep.mubr.msk.f32.mxu1 %vm4185_vm0, %v4186_v6 }
0x197e   :  { %3960 = vmatprep.subr.bf16.mxu1 %v4184_v4 }
0x197f   :  { %v1479_v38 = vpop.permute.xlu1 %1478 }
0x1a4f   :  { %v3784_v28 = vpop.f32.mrb[10].mxu1 }
0x1a50   :  { %v4461_v29 = vadd.f32 %v3784_v28, %v3576_v16  ;;  %v1331_v31 = vpop.f32.mrb[11].mxu1 }
0x1a51   :  { %v4463_v32 = vadd.f32 %v3576_v16, %v1331_v31 }
0x1a53   :  { %v1349_v33 = vrot.slane %v4463_v32, %v4253_v26  ;;  %v1342_v15 = vcombine.high %v4463_v32, %v4463_v32 }
0x1a55   :  { %v1458_v34 = vadd.f32 %v1454_v22, %v1349_v33  ;;  %v1357_v57 = vcombine.high %v1349_v33, %v1349_v33  ;;  %v1356_v17 = vrot.slane %v1342_v15, %v4253_v26 }
0x1a57   :  { %v3580_v35 = vmul.f32 -1.442695, %v1458_v34 }
0x1a59   :  { %4064 = vpow2.f32 %v3580_v35 }
0x1a63   :  { %v4065_v36 = vpop.eup %4064 }
0x1a64   :  { %v1462_v37 = vadd.f32 1.0, %v4065_v36 }
0x1a66   :  { %4066 = vrcp.f32 %v1462_v37 }
0x1a70   :  { %v4067_v62 = vpop.eup %4066 }
0x1a71   :  { %v1481_v39 = vmul.f32 %v4067_v62, %v1479_v38 }
0x1a73   :  { %1483 = vrot.lane.b32.xlu0 %v1481_v39, %s4189_s3 }
0x1ae5   :  { %v1484_v40 = vpop.permute.xlu0 %1483 }
0x1ae6   :  { %v1486_v41 = vadd.f32 %v1484_v40, %v1349_v33 }
0x1ae8   :  { %4068 = vtanh.f32 %v1486_v41  ;;  %v1358_v41 = vcombine.high %v1356_v17, %v1356_v17 }
0x1af2   :  { %v4069_v43 = vpop.eup %4068 }
0x1af3   :  { %v1488_v44 = vsub.f32 0.0, %v4069_v43 }
0x1af5   :  { %1490 = vrot.lane.b32.xlu1 %v1488_v44, %s4191_s6 }
0x1b67   :  { %v1491_v45 = vpop.permute.xlu1 %1490 }
0x1b68   :  { %v1493_v46 = vmul.f32 %v4067_v62, %v1491_v45 }
0x1b6a   :  { %1495 = vrot.lane.b32.xlu0 %v1493_v46, %s4192_s7 }
0x1bdc   :  { %v1496_v47 = vpop.permute.xlu0 %1495 }
0x1bdd   :  { %v4470_v48 = vadd.f32 %v4069_v43, %v1496_v47 }
0x1bdf   :  { %v1506_v49 = vrot.slane %v4470_v48, %v4253_v26 }
0x1be1   :  { %1507 = vrot.lane.b32.xlu1 %v1506_v49, %s4190_s0 }
0x1c53   :  { %v1508_v50 = vpop.permute.xlu1 %1507 }
0x1c54   :  { %3797 = vmatmul.mubr.msk.f32.vlgmr.msra.gmra.mrb[12].mxu1 %vm264_vm2, %v1508_v50 }
0x1c55   :  { %3962 = vmatpush3.bf16.msra.mxu1 %v4424_v42  ;;  %3810 = vmatprep.mubr.msk.f32.mxu1 %vm4185_vm0, %v4186_v6 }
0x1c56   :  { %3966 = vmatprep.subr.bf16.mxu1 %v4184_v4 }
0x1d27   :  { %v1577_v51 = vpop.f32.mrb[12].mxu1 }
0x1d28   :  { %v1588_v52 = vadd.f32 %v1577_v51, %v4448_v24  ;;  %v3798_v54 = vpop.f32.mrb[13].mxu1  ;;  %v1581_v58 = vadd.f32 %v1577_v51, %v1357_v57 }
0x1d2a   :  { %v1596_v56 = vrot.slane %v1588_v52, %v4253_v26  ;;  %v3582_v59 = vmul.f32 -1.442695, %v1581_v58 }
0x1d2c   :  { %1597 = vrot.lane.b32.xlu0 %v1596_v56, %s4190_s0  ;;  %4070 = vpow2.f32 %v3582_v59 }
0x1d36   :  { %v4071_v60 = vpop.eup %4070 }
0x1d37   :  { %v1585_v55 = vadd.f32 1.0, %v4071_v60 }
0x1d39   :  { %4072 = vrcp.f32 %v1585_v55 }
0x1d43   :  { %v4073_v61 = vpop.eup %4072 }
0x1d9e   :  { %v1598_v63 = vpop.permute.xlu0 %1597 }
0x1d9f   :  { %v1600_v0 = vmul.f32 %v4073_v61, %v1598_v63 }
0x1da1   :  { %1602 = vrot.lane.b32.xlu1 %v1600_v0, %s4189_s3 }
0x1e13   :  { %v1603_v1 = vpop.permute.xlu1 %1602 }
0x1e14   :  { %v1605_v2 = vadd.f32 %v1603_v1, %v1357_v57 }
0x1e16   :  { %4074 = vtanh.f32 %v1605_v2 }
0x1e20   :  { %v4075_v5 = vpop.eup %4074 }
0x1e21   :  { %v1607_v7 = vsub.f32 %v4470_v48, %v4075_v5 }
0x1e23   :  { %1609 = vrot.lane.b32.xlu0 %v1607_v7, %s4191_s6 }
0x1e95   :  { %v1610_v3 = vpop.permute.xlu0 %1609 }
0x1e96   :  { %v1612_v19 = vmul.f32 %v4073_v61, %v1610_v3 }
0x1e98   :  { %1614 = vrot.lane.b32.xlu1 %v1612_v19, %s4192_s7 }
0x1f0a   :  { %v1615_v30 = vpop.permute.xlu1 %1614 }
0x1f0b   :  { %v4487_v8 = vadd.f32 %v4075_v5, %v1615_v30  ;;  %v1366_v5 = vrot.slane %v4461_v29, %v4253_v26 }
0x1f0d   :  { %v1625_v9 = vrot.slane %v4487_v8, %v4253_v26 }
0x1f0f   :  { %1626 = vrot.lane.b32.xlu0 %v1625_v9, %s4190_s0 }
0x1f81   :  { %v1627_v10 = vpop.permute.xlu0 %1626 }
0x1f82   :  { %3804 = vmatmul.mubr.msk.f32.vlgmr.msra.gmra.mrb[10].mxu0 %vm264_vm2, %v1627_v10 }
0x1f83   :  { %3965 = vmatpush3.bf16.msra.mxu0 %v4424_v42  ;;  %3817 = vmatprep.mubr.msk.f32.mxu0 %vm4185_vm0, %v4186_v6 }
0x1f84   :  { %3969 = vmatprep.subr.bf16.mxu0 %v4184_v4 }
0x2055   :  { %v1696_v11 = vpop.f32.mrb[10].mxu0 }
0x2056   :  { %v1707_v12 = vadd.f32 %v1696_v11, %v4448_v24  ;;  %v3805_v13 = vpop.f32.mrb[11].mxu0  ;;  %v1700_v18 = vadd.f32 %v1696_v11, %v1356_v17 }
0x2058   :  { %v1715_v14 = vrot.slane %v1707_v12, %v4253_v26  ;;  %v3584_v20 = vmul.f32 -1.442695, %v1700_v18 }
0x205a   :  { %1716 = vrot.lane.b32.xlu1 %v1715_v14, %s4190_s0  ;;  %4076 = vpow2.f32 %v3584_v20 }
0x2064   :  { %v4077_v21 = vpop.eup %4076 }
0x2065   :  { %v1704_v22 = vadd.f32 1.0, %v4077_v21 }
0x2067   :  { %4078 = vrcp.f32 %v1704_v22 }
0x2071   :  { %v4079_v23 = vpop.eup %4078 }
0x20cc   :  { %v1717_v25 = vpop.permute.xlu1 %1716 }
0x20cd   :  { %v1719_v27 = vmul.f32 %v4079_v23, %v1717_v25 }
0x20cf   :  { %1721 = vrot.lane.b32.xlu0 %v1719_v27, %s4189_s3 }
0x2141   :  { %v1722_v53 = vpop.permute.xlu0 %1721 }
0x2142   :  { %v1724_v16 = vadd.f32 %v1722_v53, %v1356_v17 }
0x2144   :  { %4080 = vtanh.f32 %v1724_v16 }
0x214e   :  { %v4081_v28 = vpop.eup %4080 }
0x214f   :  { %v1726_v31 = vsub.f32 %v4487_v8, %v4081_v28 }
0x2151   :  { %1728 = vrot.lane.b32.xlu1 %v1726_v31, %s4191_s6 }
0x21c3   :  { %v1729_v32 = vpop.permute.xlu1 %1728 }
0x21c4   :  { %v1731_v33 = vmul.f32 %v4079_v23, %v1729_v32 }
0x21c6   :  { %1733 = vrot.lane.b32.xlu0 %v1731_v33, %s4192_s7 }
0x2238   :  { %v1734_v34 = vpop.permute.xlu0 %1733 }
0x2239   :  { %v4507_v35 = vadd.f32 %v4081_v28, %v1734_v34  ;;  %v1374_v28 = vcombine.high %v1366_v5, %v1366_v5 }
0x223b   :  { %v1744_v36 = vrot.slane %v4507_v35, %v4253_v26 }
0x223d   :  { %1745 = vrot.lane.b32.xlu1 %v1744_v36, %s4190_s0 }
0x22af   :  { %v1746_v37 = vpop.permute.xlu1 %1745 }
0x22b0   :  { %3811 = vmatmul.mubr.msk.f32.vlgmr.msra.gmra.mrb[14].mxu1 %vm264_vm2, %v1746_v37 }
0x22b1   :  { %3968 = vmatpush3.bf16.msra.mxu1 %v4424_v42  ;;  %3824 = vmatprep.mubr.msk.f32.mxu1 %vm4185_vm0, %v4186_v6 }
0x22b2   :  { %3972 = vmatprep.subr.bf16.mxu1 %v4184_v4 }
0x2383   :  { %v1815_v38 = vpop.f32.mrb[14].mxu1 }
0x2384   :  { %v1826_v62 = vadd.f32 %v1815_v38, %v4448_v24  ;;  %v3812_v39 = vpop.f32.mrb[15].mxu1  ;;  %v1819_v43 = vadd.f32 %v1815_v38, %v1358_v41 }
0x2386   :  { %v1834_v40 = vrot.slane %v1826_v62, %v4253_v26  ;;  %v3586_v44 = vmul.f32 -1.442695, %v1819_v43 }
0x2388   :  { %1835 = vrot.lane.b32.xlu0 %v1834_v40, %s4190_s0  ;;  %4082 = vpow2.f32 %v3586_v44 }
0x2392   :  { %v4083_v45 = vpop.eup %4082 }
0x2393   :  { %v1823_v46 = vadd.f32 1.0, %v4083_v45 }
0x2395   :  { %4084 = vrcp.f32 %v1823_v46 }
0x239f   :  { %v4085_v47 = vpop.eup %4084 }
0x23fa   :  { %v1836_v49 = vpop.permute.xlu0 %1835 }
0x23fb   :  { %v1838_v50 = vmul.f32 %v4085_v47, %v1836_v49 }
0x23fd   :  { %1840 = vrot.lane.b32.xlu1 %v1838_v50, %s4189_s3 }
0x246f   :  { %v1841_v51 = vpop.permute.xlu1 %1840 }
0x2470   :  { %v1843_v52 = vadd.f32 %v1841_v51, %v1358_v41 }
0x2472   :  { %4086 = vtanh.f32 %v1843_v52 }
0x247c   :  { %v4087_v54 = vpop.eup %4086 }
0x247d   :  { %v1845_v56 = vsub.f32 %v4507_v35, %v4087_v54 }
0x247f   :  { %1847 = vrot.lane.b32.xlu0 %v1845_v56, %s4191_s6 }
0x24f1   :  { %v1848_v57 = vpop.permute.xlu0 %1847 }
0x24f2   :  { %v1850_v58 = vmul.f32 %v4085_v47, %v1848_v57 }
0x24f4   :  { %1852 = vrot.lane.b32.xlu1 %v1850_v58, %s4192_s7 }
0x2566   :  { %v1853_v59 = vpop.permute.xlu1 %1852 }
0x2567   :  { %v4524_v60 = vadd.f32 %v4087_v54, %v1853_v59  ;;  %v1359_v54 = vcombine.high %v4461_v29, %v4461_v29 }
0x2569   :  { %v1863_v55 = vrot.slane %v4524_v60, %v4253_v26  ;;  %v1373_v56 = vrot.slane %v1359_v54, %v4253_v26 }
0x256b   :  { %1864 = vrot.lane.b32.xlu0 %v1863_v55, %s4190_s0 }
0x25dd   :  { %v1865_v61 = vpop.permute.xlu0 %1864 }
0x25de   :  { %3818 = vmatmul.mubr.msk.f32.vlgmr.msra.gmra.mrb[12].mxu0 %vm264_vm2, %v1865_v61 }
0x25df   :  { %3971 = vmatpush3.bf16.msra.mxu0 %v4424_v42  ;;  %3831 = vmatprep.mubr.msk.f32.mxu0 %vm4185_vm0, %v4186_v6 }
0x26b1   :  { %v1934_v63 = vpop.f32.mrb[12].mxu0 }
0x26b2   :  { %v1945_v0 = vadd.f32 %v1934_v63, %v4448_v24  ;;  %v3819_v1 = vpop.f32.mrb[13].mxu0  ;;  %v1938_v7 = vadd.f32 %v1934_v63, %v1366_v5 }
0x26b4   :  { %v1953_v2 = vrot.slane %v1945_v0, %v4253_v26  ;;  %v3588_v3 = vmul.f32 -1.442695, %v1938_v7 }
0x26b6   :  { %1954 = vrot.lane.b32.xlu1 %v1953_v2, %s4190_s0  ;;  %4088 = vpow2.f32 %v3588_v3 }
0x26c0   :  { %v4089_v19 = vpop.eup %4088 }
0x26c1   :  { %v1942_v30 = vadd.f32 1.0, %v4089_v19 }
0x26c3   :  { %4090 = vrcp.f32 %v1942_v30 }
0x26cd   :  { %v4091_v9 = vpop.eup %4090 }
0x2728   :  { %v1955_v10 = vpop.permute.xlu1 %1954 }
0x2729   :  { %v1957_v11 = vmul.f32 %v4091_v9, %v1955_v10 }
0x272b   :  { %1959 = vrot.lane.b32.xlu0 %v1957_v11, %s4189_s3 }
0x279d   :  { %v1960_v12 = vpop.permute.xlu0 %1959 }
0x279e   :  { %v1962_v13 = vadd.f32 %v1960_v12, %v1366_v5 }
0x27a0   :  { %4092 = vtanh.f32 %v1962_v13 }
0x27aa   :  { %v4093_v14 = vpop.eup %4092 }
0x27ab   :  { %v1964_v15 = vsub.f32 %v4524_v60, %v4093_v14 }
0x27ad   :  { %1966 = vrot.lane.b32.xlu1 %v1964_v15, %s4191_s6  ;;  %v1375_v15 = vcombine.high %v1373_v56, %v1373_v56 }
0x281f   :  { %v1967_v17 = vpop.permute.xlu1 %1966 }
0x2820   :  { %v1969_v18 = vmul.f32 %v4091_v9, %v1967_v17 }
0x2822   :  { %1971 = vrot.lane.b32.xlu0 %v1969_v18, %s4192_s7 }
0x2894   :  { %v1972_v20 = vpop.permute.xlu0 %1971 }
0x2895   :  { %v4542_v21 = vadd.f32 %v4093_v14, %v1972_v20 }
0x2897   :  { %v1982_v22 = vrot.slane %v4542_v21, %v4253_v26 }
0x2899   :  { %1983 = vrot.lane.b32.xlu1 %v1982_v22, %s4190_s0 }
0x290b   :  { %v1984_v23 = vpop.permute.xlu1 %1983 }
0x290c   :  { %3825 = vmatmul.mubr.msk.f32.vlgmr.msra.gmra.mrb[16].mxu1 %vm264_vm2, %v1984_v23 }
0x290d   :  { %3974 = vmatpush3.bf16.msra.mxu1 %v4424_v42  ;;  %3838 = vmatprep.mubr.msk.f32.mxu1 %vm4185_vm0, %v4186_v6 }
0x290e   :  { %3979 = vmatprep.subr.bf16.mxu1 %v4184_v4 }
0x29df   :  { %v2053_v25 = vpop.f32.mrb[16].mxu1 }
0x29e0   :  { %v2064_v27 = vadd.f32 %v2053_v25, %v4448_v24  ;;  %v3826_v53 = vpop.f32.mrb[17].mxu1  ;;  %v2057_v31 = vadd.f32 %v2053_v25, %v1374_v28 }
0x29e2   :  { %v2072_v16 = vrot.slane %v2064_v27, %v4253_v26  ;;  %v3590_v32 = vmul.f32 -1.442695, %v2057_v31 }
0x29e4   :  { %2073 = vrot.lane.b32.xlu0 %v2072_v16, %s4190_s0  ;;  %4094 = vpow2.f32 %v3590_v32 }
0x29ee   :  { %v4095_v33 = vpop.eup %4094 }
0x29ef   :  { %v2061_v34 = vadd.f32 1.0, %v4095_v33 }
0x29f1   :  { %4096 = vrcp.f32 %v2061_v34 }
0x29fb   :  { %v4097_v42 = vpop.eup %4096 }
0x2a56   :  { %v2074_v36 = vpop.permute.xlu0 %2073 }
0x2a57   :  { %v2076_v37 = vmul.f32 %v4097_v42, %v2074_v36  ;;  %v2334_v36 = vld [vmem:[%s4764_s1 + $0x80] sm:$0xff] }
0x2a59   :  { %2078 = vrot.lane.b32.xlu1 %v2076_v37, %s4189_s3 }
0x2acb   :  { %v2079_v38 = vpop.permute.xlu1 %2078 }
0x2acc   :  { %v2081_v62 = vadd.f32 %v2079_v38, %v1374_v28  ;;  %v2343_v28 = vcombine.low %v4470_v48, %v4487_v8  ;;  %v2332_v48 = vld [vmem:[%s4764_s1 + $0x70] sm:$0xff] }
0x2ace   :  { %4098 = vtanh.f32 %v2081_v62  ;;  %v2351_v34 = vrot.slane %v2343_v28, %v4253_v26 }
0x2ad8   :  { %v4099_v39 = vpop.eup %4098 }
0x2ad9   :  { %v2083_v40 = vsub.f32 %v4542_v21, %v4099_v39 }
0x2adb   :  { %2085 = vrot.lane.b32.xlu0 %v2083_v40, %s4191_s6  ;;  %v3598_v40 = vld [vmem:[%s4764_s1 + $0x91] ss:$0 sm:$0xff] }
0x2b4d   :  { %v2086_v41 = vpop.permute.xlu0 %2085 }
0x2b4e   :  { %v2088_v43 = vmul.f32 %v4097_v42, %v2086_v41 }
0x2b50   :  { %2090 = vrot.lane.b32.xlu1 %v2088_v43, %s4192_s7 }
0x2bc2   :  { %v2091_v44 = vpop.permute.xlu1 %2090 }
0x2bc3   :  { %v4559_v45 = vadd.f32 %v4099_v39, %v2091_v44 }
0x2bc5   :  { %v2101_v46 = vrot.slane %v4559_v45, %v4253_v26  ;;  %v2360_v43 = vcombine.low %v4542_v21, %v4559_v45 }
0x2bc7   :  { %2102 = vrot.lane.b32.xlu0 %v2101_v46, %s4190_s0 }
0x2c39   :  { %v2103_v47 = vpop.permute.xlu0 %2102 }
0x2c3a   :  { %3832 = vmatmul.mubr.msk.f32.vlgmr.msra.gmra.mrb[14].mxu0 %vm264_vm2, %v2103_v47 }
0x2d0d   :  { %v2172_v49 = vpop.f32.mrb[14].mxu0 }
0x2d0e   :  { %v2183_v50 = vadd.f32 %v2172_v49, %v4448_v24  ;;  %v3833_v51 = vpop.f32.mrb[15].mxu0  ;;  %v2176_v57 = vadd.f32 %v2172_v49, %v1373_v56  ;;  %v2368_v49 = vrot.slane %v2360_v43, %v4253_v26 }
0x2d10   :  { %v2191_v52 = vrot.slane %v2183_v50, %v4253_v26  ;;  %v3592_v58 = vmul.f32 -1.442695, %v2176_v57 }
0x2d12   :  { %2192 = vrot.lane.b32.xlu1 %v2191_v52, %s4190_s0  ;;  %4100 = vpow2.f32 %v3592_v58 }
0x2d1c   :  { %v4101_v59 = vpop.eup %4100 }
0x2d1d   :  { %v2180_v55 = vadd.f32 1.0, %v4101_v59 }
0x2d1f   :  { %4102 = vrcp.f32 %v2180_v55 }
0x2d29   :  { %v4103_v61 = vpop.eup %4102 }
0x2d84   :  { %v2193_v63 = vpop.permute.xlu1 %2192 }
0x2d85   :  { %v2195_v0 = vmul.f32 %v4103_v61, %v2193_v63 }
0x2d87   :  { %2197 = vrot.lane.b32.xlu0 %v2195_v0, %s4189_s3 }
0x2df9   :  { %v2198_v1 = vpop.permute.xlu0 %2197 }
0x2dfa   :  { %v2200_v2 = vadd.f32 %v2198_v1, %v1373_v56 }
0x2dfc   :  { %4104 = vtanh.f32 %v2200_v2 }
0x2e06   :  { %v4105_v5 = vpop.eup %4104 }
0x2e07   :  { %v2202_v7 = vsub.f32 %v4559_v45, %v4105_v5  ;;  %v3595_v45 = vld [vmem:[%s4764_s1 + $0x90] ss:$0 sm:$0xff] }
0x2e09   :  { %2204 = vrot.lane.b32.xlu1 %v2202_v7, %s4191_s6 }
0x2e7b   :  { %v2205_v29 = vpop.permute.xlu1 %2204 }
0x2e7c   :  { %v2207_v3 = vmul.f32 %v4103_v61, %v2205_v29 }
0x2e7e   :  { %2209 = vrot.lane.b32.xlu0 %v2207_v3, %s4192_s7 }
0x2ef0   :  { %v2210_v19 = vpop.permute.xlu0 %2209 }
0x2ef1   :  { %v2212_v30 = vadd.f32 %v4105_v5, %v2210_v19 }
0x2ef3   :  { %v2220_v9 = vrot.slane %v2212_v30, %v4253_v26 }
0x2ef5   :  { %2221 = vrot.lane.b32.xlu1 %v2220_v9, %s4190_s0 }
0x2f67   :  { %v2222_v10 = vpop.permute.xlu1 %2221 }
0x2f68   :  { %3839 = vmatmul.mubr.msk.f32.vlgmr.msra.gmra.mrb[18].mxu1 %vm264_vm2, %v2222_v10 }
0x2f69   :  { %3852 = vmatprep.mubr.msk.f32.mxu1 %vm4185_vm0, %v4186_v6 }
0x303b   :  { %v2291_v11 = vpop.f32.mrb[18].mxu1 }
0x303c   :  { %v2302_v12 = vadd.f32 %v2291_v11, %v4448_v24  ;;  %v3840_v13 = vpop.f32.mrb[19].mxu1  ;;  %v2295_v17 = vadd.f32 %v2291_v11, %v1375_v15  ;;  %v2344_v24 = vcombine.low %v4507_v35, %v4524_v60  ;;  %v2335_v35 = vld [vmem:[%s4764_s1 + $0x88] sm:$0xff]  ;;  %v2333_v60 = vld [vmem:[%s4764_s1 + $0x78] sm:$0xff] }
0x303d   :  { %v4601_v8 = vpack.c.bf16 %v2335_v35, %v2334_v36  ;;  %v3975_v38 = vpack.c.bf16 %v2333_v60, %v2332_v48 }
0x303e   :  { %v2310_v14 = vrot.slane %v2302_v12, %v4253_v26  ;;  %v3594_v18 = vmul.f32 -1.442695, %v2295_v17  ;;  %v2358_v33 = vrot.slane %v2344_v24, %v4253_v26 }
0x303f   :  { %3981 = vmatpush3.bf16.msra.mxu1 %v4601_v8  ;;  %3976 = vmatprep.subr.bf16.mxu0 %v3975_v38 }
0x3040   :  { %2311 = vrot.lane.b32.xlu0 %v2310_v14, %s4190_s0  ;;  %4106 = vpow2.f32 %v3594_v18  ;;  %v2359_v42 = vcombine.low %v2351_v34, %v2358_v33  ;;  %3985 = vmatprep.subr.bf16.mxu1 %v4184_v4 }
0x3041   :  { %3978 = vmatpush3.bf16.msra.mxu0 %v3975_v38 }
0x3042   :  { %3853 = vmatmul.mubr.f32.vlgmr.msra.gmra.mrb[20].mxu1 %v4186_v6  ;;  %3982 = vmatprep.subr.bf16.mxu0 %v4184_v4 }
0x3043   :  { %3987 = vmatpush3.bf16.msra.mxu1 %v4601_v8  ;;  %3866 = vmatprep.mubr.msk.f32.mxu1 %vm4185_vm0, %v4186_v6 }
0x3044   :  { %3991 = vmatprep.subr.bf16.mxu1 %v4184_v4 }
0x304a   :  { %v4107_v20 = vpop.eup %4106 }
0x304b   :  { %v2299_v22 = vadd.f32 1.0, %v4107_v20 }
0x304d   :  { %4108 = vrcp.f32 %v2299_v22 }
0x3057   :  { %v4109_v23 = vpop.eup %4108 }
0x30b2   :  { %v2312_v25 = vpop.permute.xlu0 %2311 }
0x30b3   :  { %v2314_v27 = vmul.f32 %v4109_v23, %v2312_v25 }
0x30b5   :  { %2316 = vrot.lane.b32.xlu1 %v2314_v27, %s4189_s3 }
0x3115   :  { %v2574_v51 = vpop.f32.mrb[20].mxu1 }
0x3116   :  { %v3854_v52 = vpop.f32.mrb[21].mxu1 }
0x3127   :  { %v2317_v53 = vpop.permute.xlu1 %2316 }
0x3128   :  { %v2319_v16 = vadd.f32 %v2317_v53, %v1375_v15 }
0x312a   :  { %4110 = vtanh.f32 %v2319_v16 }
0x3134   :  { %v4111_v31 = vpop.eup %4110 }
0x3135   :  { %v2321_v32 = vsub.f32 %v2212_v30, %v4111_v31 }
0x3137   :  { %2323 = vrot.lane.b32.xlu0 %v2321_v32, %s4191_s6 }
0x313b   :  { %2377 = vrot.lane.b32.xlu0 %v2359_v42, %s4190_s0 }
0x313f   :  { %2586 = vrot.lane.b32.xlu0 %v3598_v40, %s4189_s3 }
0x31a9   :  { %v2324_v37 = vpop.permute.xlu0 %2323 }
0x31aa   :  { %v2326_v62 = vmul.f32 %v4109_v23, %v2324_v37 }
0x31ac   :  { %2328 = vrot.lane.b32.xlu1 %v2326_v62, %s4192_s7 }
0x31ad   :  { %v2378_v39 = vpop.permute.xlu0 %2377 }
0x31ae   :  { %3845 = vmatprep.mubr.msk.f32.mxu0 %vm264_vm2, %v2378_v39 }
0x31b1   :  { %v4625_v54 = vpop.permute.xlu0 %2586 }
0x31b2   :  { %v2589_v56 = vadd.f32 %v4625_v54, %v2574_v51 }
0x31b4   :  { %v2597_v57 = vrot.slane %v2589_v56, %v4253_v26 }
0x321e   :  { %v2329_v41 = vpop.permute.xlu1 %2328 }
0x321f   :  { %v2331_v44 = vadd.f32 %v4111_v31, %v2329_v41 }
0x3221   :  { %v2361_v46 = vcombine.low %v2212_v30, %v2331_v44 }
0x3223   :  { %v2375_v47 = vrot.slane %v2361_v46, %v4253_v26 }
0x3225   :  { %v2376_v50 = vcombine.low %v2368_v49, %v2375_v47 }
0x3227   :  { %2379 = vrot.lane.b32.xlu1 %v2376_v50, %s4190_s0 }
0x322b   :  { %2598 = vrot.lane.b32.xlu1 %v2597_v57, %s4190_s0 }
0x3299   :  { %v2380_v21 = vpop.permute.xlu1 %2379 }
0x329a   :  { %3846 = vmatmul.mubr.msk.f32.vlgmr.msra.gmra.mrb[16].mxu0 %vm264_vm2, %v2380_v21 }
0x329b   :  { %3984 = vmatpush3.bf16.msra.mxu0 %v4601_v8  ;;  %3859 = vmatprep.mubr.msk.f32.mxu0 %vm4185_vm0, %v4186_v6 }
0x329c   :  { %3988 = vmatprep.subr.bf16.mxu0 %v4184_v4 }
0x329d   :  { %v2599_v7 = vpop.permute.xlu1 %2598 }
0x336d   :  { %v3847_v58 = vpop.f32.mrb[16].mxu0 }
0x336e   :  { %v4638_v59 = vadd.f32 %v3847_v58, %v3595_v45  ;;  %v2451_v55 = vpop.f32.mrb[17].mxu0 }
0x336f   :  { %v4640_v61 = vadd.f32 %v3595_v45, %v2451_v55 }
0x3371   :  { %v2469_v63 = vrot.slane %v4640_v61, %v4253_v26  ;;  %v2462_v44 = vcombine.high %v4640_v61, %v4640_v61 }
0x3373   :  { %v2578_v0 = vadd.f32 %v2574_v51, %v2469_v63  ;;  %v2477_v25 = vcombine.high %v2469_v63, %v2469_v63  ;;  %v2476_v46 = vrot.slane %v2462_v44, %v4253_v26 }
0x3375   :  { %v3599_v1 = vmul.f32 -1.442695, %v2578_v0 }
0x3377   :  { %4112 = vpow2.f32 %v3599_v1 }
0x3381   :  { %v4113_v2 = vpop.eup %4112 }
0x3382   :  { %v2582_v5 = vadd.f32 1.0, %v4113_v2 }
0x3384   :  { %4114 = vrcp.f32 %v2582_v5 }
0x338e   :  { %v4115_v29 = vpop.eup %4114 }
0x338f   :  { %v2601_v3 = vmul.f32 %v4115_v29, %v2599_v7 }
0x3391   :  { %2603 = vrot.lane.b32.xlu0 %v2601_v3, %s4189_s3 }
0x3403   :  { %v2604_v19 = vpop.permute.xlu0 %2603 }
0x3404   :  { %v2606_v30 = vadd.f32 %v2604_v19, %v2469_v63 }
0x3406   :  { %4116 = vtanh.f32 %v2606_v30  ;;  %v2478_v30 = vcombine.high %v2476_v46, %v2476_v46 }
0x3410   :  { %v4117_v9 = vpop.eup %4116 }
0x3411   :  { %v2608_v10 = vsub.f32 0.0, %v4117_v9 }
0x3413   :  { %2610 = vrot.lane.b32.xlu1 %v2608_v10, %s4191_s6 }
0x3485   :  { %v2611_v11 = vpop.permute.xlu1 %2610 }
0x3486   :  { %v2613_v12 = vmul.f32 %v4115_v29, %v2611_v11 }
0x3488   :  { %2615 = vrot.lane.b32.xlu0 %v2613_v12, %s4192_s7 }
0x34fa   :  { %v2616_v13 = vpop.permute.xlu0 %2615 }
0x34fb   :  { %v2618_v14 = vadd.f32 %v4117_v9, %v2616_v13 }
0x34fd   :  { %v2626_v15 = vrot.slane %v2618_v14, %v4253_v26 }
0x34ff   :  { %2627 = vrot.lane.b32.xlu1 %v2626_v15, %s4190_s0 }
0x3571   :  { %v2628_v17 = vpop.permute.xlu1 %2627 }
0x3572   :  { %3860 = vmatmul.mubr.msk.f32.vlgmr.msra.gmra.mrb[18].mxu0 %vm264_vm2, %v2628_v17 }
0x3573   :  { %3990 = vmatpush3.bf16.msra.mxu0 %v4601_v8  ;;  %3873 = vmatprep.mubr.msk.f32.mxu0 %vm4185_vm0, %v4186_v6 }
0x3574   :  { %3994 = vmatprep.subr.bf16.mxu0 %v4184_v4 }
0x3645   :  { %v2697_v18 = vpop.f32.mrb[18].mxu0 }
0x3646   :  { %v2708_v20 = vadd.f32 %v2697_v18, %v4625_v54  ;;  %v3861_v22 = vpop.f32.mrb[19].mxu0  ;;  %v2701_v27 = vadd.f32 %v2697_v18, %v2477_v25 }
0x3648   :  { %v2716_v23 = vrot.slane %v2708_v20, %v4253_v26  ;;  %v3601_v53 = vmul.f32 -1.442695, %v2701_v27 }
0x364a   :  { %2717 = vrot.lane.b32.xlu0 %v2716_v23, %s4190_s0  ;;  %4118 = vpow2.f32 %v3601_v53 }
0x3654   :  { %v4119_v16 = vpop.eup %4118 }
0x3655   :  { %v2705_v24 = vadd.f32 1.0, %v4119_v16 }
0x3657   :  { %4120 = vrcp.f32 %v2705_v24 }
0x3661   :  { %v4121_v28 = vpop.eup %4120 }
0x36bc   :  { %v2718_v31 = vpop.permute.xlu0 %2717 }
0x36bd   :  { %v2720_v32 = vmul.f32 %v4121_v28, %v2718_v31 }
0x36bf   :  { %2722 = vrot.lane.b32.xlu1 %v2720_v32, %s4189_s3 }
0x3731   :  { %v2723_v33 = vpop.permute.xlu1 %2722 }
0x3732   :  { %v2725_v34 = vadd.f32 %v2723_v33, %v2477_v25 }
0x3734   :  { %4122 = vtanh.f32 %v2725_v34  ;;  %v2486_v34 = vrot.slane %v4638_v59, %v4253_v26 }
0x373e   :  { %v4123_v42 = vpop.eup %4122 }
0x373f   :  { %v2727_v36 = vsub.f32 %v2618_v14, %v4123_v42 }
0x3741   :  { %2729 = vrot.lane.b32.xlu0 %v2727_v36, %s4191_s6 }
0x37b3   :  { %v2730_v35 = vpop.permute.xlu0 %2729 }
0x37b4   :  { %v2732_v48 = vmul.f32 %v4121_v28, %v2730_v35 }
0x37b6   :  { %2734 = vrot.lane.b32.xlu1 %v2732_v48, %s4192_s7 }
0x3828   :  { %v2735_v60 = vpop.permute.xlu1 %2734 }
0x3829   :  { %v2737_v37 = vadd.f32 %v4123_v42, %v2735_v60 }
0x382b   :  { %v2745_v38 = vrot.slane %v2737_v37, %v4253_v26 }
0x382d   :  { %2746 = vrot.lane.b32.xlu0 %v2745_v38, %s4190_s0 }
0x389f   :  { %v2747_v62 = vpop.permute.xlu0 %2746 }
0x38a0   :  { %3867 = vmatmul.mubr.msk.f32.vlgmr.msra.gmra.mrb[22].mxu1 %vm264_vm2, %v2747_v62 }
0x38a1   :  { %3993 = vmatpush3.bf16.msra.mxu1 %v4601_v8  ;;  %3880 = vmatprep.mubr.msk.f32.mxu1 %vm4185_vm0, %v4186_v6 }
0x38a2   :  { %3997 = vmatprep.subr.bf16.mxu1 %v4184_v4 }
0x3973   :  { %v2816_v39 = vpop.f32.mrb[22].mxu1 }
0x3974   :  { %v2827_v40 = vadd.f32 %v2816_v39, %v4625_v54  ;;  %v3868_v41 = vpop.f32.mrb[23].mxu1  ;;  %v2820_v47 = vadd.f32 %v2816_v39, %v2476_v46 }
0x3976   :  { %v2835_v43 = vrot.slane %v2827_v40, %v4253_v26  ;;  %v3603_v49 = vmul.f32 -1.442695, %v2820_v47 }
0x3978   :  { %2836 = vrot.lane.b32.xlu1 %v2835_v43, %s4190_s0  ;;  %4124 = vpow2.f32 %v3603_v49 }
0x3982   :  { %v4125_v50 = vpop.eup %4124 }
0x3983   :  { %v2824_v51 = vadd.f32 1.0, %v4125_v50 }
0x3985   :  { %4126 = vrcp.f32 %v2824_v51 }
0x398f   :  { %v4127_v52 = vpop.eup %4126 }
0x39ea   :  { %v2837_v56 = vpop.permute.xlu1 %2836 }
0x39eb   :  { %v2839_v57 = vmul.f32 %v4127_v52, %v2837_v56 }
0x39ed   :  { %2841 = vrot.lane.b32.xlu0 %v2839_v57, %s4189_s3  ;;  %v2494_v57 = vcombine.high %v2486_v34, %v2486_v34 }
0x3a5f   :  { %v2842_v21 = vpop.permute.xlu0 %2841 }
0x3a60   :  { %v2844_v45 = vadd.f32 %v2842_v21, %v2476_v46 }
0x3a62   :  { %4128 = vtanh.f32 %v2844_v45 }
0x3a6c   :  { %v4129_v58 = vpop.eup %4128 }
0x3a6d   :  { %v2846_v55 = vsub.f32 %v2737_v37, %v4129_v58 }
0x3a6f   :  { %2848 = vrot.lane.b32.xlu1 %v2846_v55, %s4191_s6 }
0x3ae1   :  { %v2849_v61 = vpop.permute.xlu1 %2848 }
0x3ae2   :  { %v2851_v63 = vmul.f32 %v4127_v52, %v2849_v61 }
0x3ae4   :  { %2853 = vrot.lane.b32.xlu0 %v2851_v63, %s4192_s7 }
0x3b56   :  { %v2854_v0 = vpop.permute.xlu0 %2853 }
0x3b57   :  { %v2856_v1 = vadd.f32 %v4129_v58, %v2854_v0 }
0x3b59   :  { %v2864_v2 = vrot.slane %v2856_v1, %v4253_v26 }
0x3b5b   :  { %2865 = vrot.lane.b32.xlu1 %v2864_v2, %s4190_s0 }
0x3bcd   :  { %v2866_v5 = vpop.permute.xlu1 %2865 }
0x3bce   :  { %3874 = vmatmul.mubr.msk.f32.vlgmr.msra.gmra.mrb[20].mxu0 %vm264_vm2, %v2866_v5 }
0x3bcf   :  { %3996 = vmatpush3.bf16.msra.mxu0 %v4601_v8  ;;  %3887 = vmatprep.mubr.msk.f32.mxu0 %vm4185_vm0, %v4186_v6 }
0x3bd0   :  { %4000 = vmatprep.subr.bf16.mxu0 %v4184_v4 }
0x3ca1   :  { %v2935_v7 = vpop.f32.mrb[20].mxu0 }
0x3ca2   :  { %v2946_v29 = vadd.f32 %v2935_v7, %v4625_v54  ;;  %v3875_v3 = vpop.f32.mrb[21].mxu0  ;;  %v2939_v9 = vadd.f32 %v2935_v7, %v2478_v30 }
0x3ca4   :  { %v2954_v19 = vrot.slane %v2946_v29, %v4253_v26  ;;  %v3605_v10 = vmul.f32 -1.442695, %v2939_v9 }
0x3ca6   :  { %2955 = vrot.lane.b32.xlu0 %v2954_v19, %s4190_s0  ;;  %4130 = vpow2.f32 %v3605_v10 }
0x3cb0   :  { %v4131_v11 = vpop.eup %4130 }
0x3cb1   :  { %v2943_v12 = vadd.f32 1.0, %v4131_v11 }
0x3cb3   :  { %4132 = vrcp.f32 %v2943_v12 }
0x3cbd   :  { %v4133_v13 = vpop.eup %4132 }
0x3d18   :  { %v2956_v14 = vpop.permute.xlu0 %2955 }
0x3d19   :  { %v2958_v15 = vmul.f32 %v4133_v13, %v2956_v14  ;;  %v2479_v14 = vcombine.high %v4638_v59, %v4638_v59 }
0x3d1b   :  { %2960 = vrot.lane.b32.xlu1 %v2958_v15, %s4189_s3  ;;  %v2493_v15 = vrot.slane %v2479_v14, %v4253_v26 }
0x3d8d   :  { %v2961_v17 = vpop.permute.xlu1 %2960 }
0x3d8e   :  { %v2963_v18 = vadd.f32 %v2961_v17, %v2478_v30 }
0x3d90   :  { %4134 = vtanh.f32 %v2963_v18 }
0x3d9a   :  { %v4135_v20 = vpop.eup %4134 }
0x3d9b   :  { %v2965_v22 = vsub.f32 %v2856_v1, %v4135_v20 }
0x3d9d   :  { %2967 = vrot.lane.b32.xlu0 %v2965_v22, %s4191_s6 }
0x3e0f   :  { %v2968_v23 = vpop.permute.xlu0 %2967 }
0x3e10   :  { %v2970_v25 = vmul.f32 %v4133_v13, %v2968_v23 }
0x3e12   :  { %2972 = vrot.lane.b32.xlu1 %v2970_v25, %s4192_s7 }
0x3e84   :  { %v2973_v27 = vpop.permute.xlu1 %2972 }
0x3e85   :  { %v2975_v53 = vadd.f32 %v4135_v20, %v2973_v27 }
0x3e87   :  { %v2983_v16 = vrot.slane %v2975_v53, %v4253_v26 }
0x3e89   :  { %2984 = vrot.lane.b32.xlu0 %v2983_v16, %s4190_s0 }
0x3efb   :  { %v2985_v24 = vpop.permute.xlu0 %2984 }
0x3efc   :  { %3881 = vmatmul.mubr.msk.f32.vlgmr.msra.gmra.mrb[24].mxu1 %vm264_vm2, %v2985_v24 }
0x3efd   :  { %3999 = vmatpush3.bf16.msra.mxu1 %v4601_v8  ;;  %3894 = vmatprep.mubr.msk.f32.mxu1 %vm4185_vm0, %v4186_v6 }
0x3efe   :  { %4003 = vmatprep.subr.bf16.mxu1 %v4184_v4 }
0x3fcf   :  { %v3054_v28 = vpop.f32.mrb[24].mxu1 }
0x3fd0   :  { %v3065_v31 = vadd.f32 %v3054_v28, %v4625_v54  ;;  %v3882_v32 = vpop.f32.mrb[25].mxu1  ;;  %v3058_v42 = vadd.f32 %v3054_v28, %v2486_v34 }
0x3fd2   :  { %v3073_v33 = vrot.slane %v3065_v31, %v4253_v26  ;;  %v3607_v36 = vmul.f32 -1.442695, %v3058_v42 }
0x3fd4   :  { %3074 = vrot.lane.b32.xlu1 %v3073_v33, %s4190_s0  ;;  %4136 = vpow2.f32 %v3607_v36 }
0x3fde   :  { %v4137_v35 = vpop.eup %4136 }
0x3fdf   :  { %v3062_v48 = vadd.f32 1.0, %v4137_v35 }
0x3fe1   :  { %4138 = vrcp.f32 %v3062_v48 }
0x3feb   :  { %v4139_v60 = vpop.eup %4138 }
0x4046   :  { %v3075_v37 = vpop.permute.xlu1 %3074 }
0x4047   :  { %v3077_v4 = vmul.f32 %v4139_v60, %v3075_v37 }
0x4049   :  { %3079 = vrot.lane.b32.xlu0 %v3077_v4, %s4189_s3 }
0x40bb   :  { %v3080_v38 = vpop.permute.xlu0 %3079 }
0x40bc   :  { %v3082_v62 = vadd.f32 %v3080_v38, %v2486_v34 }
0x40be   :  { %4140 = vtanh.f32 %v3082_v62 }
0x40c8   :  { %v4141_v39 = vpop.eup %4140 }
0x40c9   :  { %v3084_v40 = vsub.f32 %v2975_v53, %v4141_v39 }
0x40cb   :  { %3086 = vrot.lane.b32.xlu1 %v3084_v40, %s4191_s6 }
0x413d   :  { %v3087_v41 = vpop.permute.xlu1 %3086 }
0x413e   :  { %v3089_v43 = vmul.f32 %v4139_v60, %v3087_v41  ;;  %v2495_v60 = vcombine.high %v2493_v15, %v2493_v15 }
0x4140   :  { %3091 = vrot.lane.b32.xlu0 %v3089_v43, %s4192_s7 }
0x41b2   :  { %v3092_v44 = vpop.permute.xlu0 %3091 }
0x41b3   :  { %v3094_v46 = vadd.f32 %v4141_v39, %v3092_v44 }
0x41b5   :  { %v3102_v47 = vrot.slane %v3094_v46, %v4253_v26 }
0x41b7   :  { %3103 = vrot.lane.b32.xlu1 %v3102_v47, %s4190_s0  ;;  %v3452_v47 = vld [vmem:[%s4764_s1 + $0x98] sm:$0xff] }
0x4229   :  { %v3104_v49 = vpop.permute.xlu1 %3103 }
0x422a   :  { %3888 = vmatmul.mubr.msk.f32.vlgmr.msra.gmra.mrb[22].mxu0 %vm264_vm2, %v3104_v49  ;;  %v3453_v49 = vld [vmem:[%s4764_s1 + $0xa0] sm:$0xff] }
0x422b   :  { %4002 = vmatpush3.bf16.msra.mxu0 %v4601_v8  ;;  %3901 = vmatprep.mubr.msk.f32.mxu0 %vm4185_vm0, %v4186_v6 }
0x42fd   :  { %v3173_v50 = vpop.f32.mrb[22].mxu0 }
0x42fe   :  { %v3184_v51 = vadd.f32 %v3173_v50, %v4625_v54  ;;  %v3889_v52 = vpop.f32.mrb[23].mxu0  ;;  %v3177_v21 = vadd.f32 %v3173_v50, %v2494_v57  ;;  %v4004_v50 = vpack.c.bf16 %v3453_v49, %v3452_v47 }
0x4300   :  { %v3192_v56 = vrot.slane %v3184_v51, %v4253_v26  ;;  %v3609_v45 = vmul.f32 -1.442695, %v3177_v21 }
0x4302   :  { %3193 = vrot.lane.b32.xlu0 %v3192_v56, %s4190_s0  ;;  %4142 = vpow2.f32 %v3609_v45 }
0x430c   :  { %v4143_v58 = vpop.eup %4142 }
0x430d   :  { %v3181_v55 = vadd.f32 1.0, %v4143_v58  ;;  %v3614_v58 = vld [vmem:[%s4764_s1 + $0xa8] ss:$0 sm:$0xff] }
0x430f   :  { %4144 = vrcp.f32 %v3181_v55 }
0x4319   :  { %v4145_v61 = vpop.eup %4144 }
0x4374   :  { %v3194_v8 = vpop.permute.xlu0 %3193 }
0x4375   :  { %v3196_v63 = vmul.f32 %v4145_v61, %v3194_v8 }
0x4377   :  { %3198 = vrot.lane.b32.xlu1 %v3196_v63, %s4189_s3 }
0x43e9   :  { %v3199_v0 = vpop.permute.xlu1 %3198 }
0x43ea   :  { %v3201_v1 = vadd.f32 %v3199_v0, %v2494_v57 }
0x43ec   :  { %4146 = vtanh.f32 %v3201_v1 }
0x43f6   :  { %v4147_v2 = vpop.eup %4146 }
0x43f7   :  { %v3203_v5 = vsub.f32 %v3094_v46, %v4147_v2 }
0x43f9   :  { %3205 = vrot.lane.b32.xlu0 %v3203_v5, %s4191_s6 }
0x446b   :  { %v3206_v7 = vpop.permute.xlu0 %3205 }
0x446c   :  { %v3208_v29 = vmul.f32 %v4145_v61, %v3206_v7 }
0x446e   :  { %3210 = vrot.lane.b32.xlu1 %v3208_v29, %s4192_s7 }
0x44e0   :  { %v3211_v3 = vpop.permute.xlu1 %3210 }
0x44e1   :  { %v3213_v19 = vadd.f32 %v4147_v2, %v3211_v3 }
0x44e3   :  { %v3221_v30 = vrot.slane %v3213_v19, %v4253_v26 }
0x44e5   :  { %3222 = vrot.lane.b32.xlu0 %v3221_v30, %s4190_s0 }
0x4557   :  { %v3223_v9 = vpop.permute.xlu0 %3222 }
0x4558   :  { %3895 = vmatmul.mubr.msk.f32.vlgmr.msra.gmra.mrb[26].mxu1 %vm264_vm2, %v3223_v9 }
0x4559   :  { %3908 = vmatprep.mubr.msk.f32.mxu1 %vm4185_vm0, %v4186_v6  ;;  %4005 = vmatpush3.bf16.msra.mxu1 %v4004_v50 }
0x462b   :  { %v3292_v10 = vpop.f32.mrb[26].mxu1 }
0x462c   :  { %v3303_v11 = vadd.f32 %v3292_v10, %v4625_v54  ;;  %v3896_v12 = vpop.f32.mrb[27].mxu1  ;;  %v3296_v17 = vadd.f32 %v3292_v10, %v2493_v15 }
0x462e   :  { %v3311_v13 = vrot.slane %v3303_v11, %v4253_v26  ;;  %v3611_v18 = vmul.f32 -1.442695, %v3296_v17 }
0x4630   :  { %3312 = vrot.lane.b32.xlu1 %v3311_v13, %s4190_s0  ;;  %4148 = vpow2.f32 %v3611_v18 }
0x463a   :  { %v4149_v20 = vpop.eup %4148 }
0x463b   :  { %v3300_v22 = vadd.f32 1.0, %v4149_v20 }
0x463d   :  { %4150 = vrcp.f32 %v3300_v22 }
0x4647   :  { %v4151_v6 = vpop.eup %4150 }
0x46a2   :  { %v3313_v23 = vpop.permute.xlu1 %3312 }
0x46a3   :  { %v3315_v25 = vmul.f32 %v4151_v6, %v3313_v23 }
0x46a5   :  { %3317 = vrot.lane.b32.xlu0 %v3315_v25, %s4189_s3 }
0x4717   :  { %v3318_v27 = vpop.permute.xlu0 %3317 }
0x4718   :  { %v3320_v53 = vadd.f32 %v3318_v27, %v2493_v15 }
0x471a   :  { %4152 = vtanh.f32 %v3320_v53 }
0x4724   :  { %v4153_v16 = vpop.eup %4152 }
0x4725   :  { %v3322_v24 = vsub.f32 %v3213_v19, %v4153_v16 }
0x4727   :  { %3324 = vrot.lane.b32.xlu1 %v3322_v24, %s4191_s6 }
0x4799   :  { %v3325_v59 = vpop.permute.xlu1 %3324 }
0x479a   :  { %v3327_v28 = vmul.f32 %v4151_v6, %v3325_v59 }
0x479c   :  { %3329 = vrot.lane.b32.xlu0 %v3327_v28, %s4192_s7 }
0x480e   :  { %v3330_v31 = vpop.permute.xlu0 %3329 }
0x480f   :  { %v3332_v32 = vadd.f32 %v4153_v16, %v3330_v31 }
0x4811   :  { %v3340_v33 = vrot.slane %v3332_v32, %v4253_v26 }
0x4813   :  { %3341 = vrot.lane.b32.xlu1 %v3340_v33, %s4190_s0 }
0x4885   :  { %v3342_v34 = vpop.permute.xlu1 %3341 }
0x4886   :  { %3902 = vmatmul.mubr.msk.f32.vlgmr.msra.gmra.mrb[24].mxu0 %vm264_vm2, %v3342_v34 }
0x4959   :  { %v3411_v42 = vpop.f32.mrb[24].mxu0 }
0x495a   :  { %v3422_v36 = vadd.f32 %v3411_v42, %v4625_v54  ;;  %v3903_v35 = vpop.f32.mrb[25].mxu0  ;;  %v3415_v37 = vadd.f32 %v3411_v42, %v2495_v60 }
0x495c   :  { %v3430_v48 = vrot.slane %v3422_v36, %v4253_v26  ;;  %v3613_v4 = vmul.f32 -1.442695, %v3415_v37 }
0x495e   :  { %3431 = vrot.lane.b32.xlu0 %v3430_v48, %s4190_s0  ;;  %4154 = vpow2.f32 %v3613_v4 }
0x4968   :  { %v4155_v38 = vpop.eup %4154 }
0x4969   :  { %v3419_v62 = vadd.f32 1.0, %v4155_v38 }
0x496b   :  { %4156 = vrcp.f32 %v3419_v62 }
0x4975   :  { %v4157_v39 = vpop.eup %4156 }
0x49d0   :  { %v3432_v40 = vpop.permute.xlu0 %3431 }
0x49d1   :  { %v3434_v41 = vmul.f32 %v4157_v39, %v3432_v40 }
0x49d3   :  { %3436 = vrot.lane.b32.xlu1 %v3434_v41, %s4189_s3 }
0x4a45   :  { %v3437_v43 = vpop.permute.xlu1 %3436 }
0x4a46   :  { %v3439_v44 = vadd.f32 %v3437_v43, %v2495_v60 }
0x4a48   :  { %4158 = vtanh.f32 %v3439_v44 }
0x4a52   :  { %v4159_v54 = vpop.eup %4158 }
0x4a53   :  { %v3441_v46 = vsub.f32 %v3332_v32, %v4159_v54 }
0x4a55   :  { %3443 = vrot.lane.b32.xlu0 %v3441_v46, %s4191_s6 }
0x4ac7   :  { %v3444_v51 = vpop.permute.xlu0 %3443 }
0x4ac8   :  { %v3446_v52 = vmul.f32 %v4157_v39, %v3444_v51 }
0x4aca   :  { %3448 = vrot.lane.b32.xlu1 %v3446_v52, %s4192_s7  ;;  %s4160_s7 = scalar_lea.vmem %s3550_s12, 32 }
0x4acb   :  { %p4161_p0 = scmp.ne.s32.totalorder %s3550_s12, %s4160_s7  ;;  %p4166_p2 = scmp.lt.s32.totalorder %s4160_s7, %s4160_s7 }
0x4acd   :  { %p4167_p3 = por %p4166_p2, %p4165_p1 }
0x4acf   :  { %p4168_p4 = pnand %p4167_p3, %p4161_p0 }
0x4b3c   :  { %v3449_v56 = vpop.permute.xlu1 %3448 }
0x4b3d   :  { %v3451_v57 = vadd.f32 %v4159_v54, %v3449_v56 }
0x4b3f   :  { %v3466_v21 = vrot.slane %v3451_v57, %v4253_v26 }
0x4b41   :  { %3467 = vrot.lane.b32.xlu0 %v3466_v21, %s4190_s0 }
0x4bb3   :  { %v3468_v45 = vpop.permute.xlu0 %3467 }
0x4bb4   :  { %3909 = vmatmul.mubr.msk.f32.vlgmr.msra.gmra.mrb[28].mxu1 %vm264_vm2, %v3468_v45 }
0x4c87   :  { %v3537_v55 = vpop.f32.mrb[28].mxu1 }
0x4c88   :  { %v3538_v61 = vadd.f32 %v3614_v58, %v3537_v55  ;;  %v3910_v8 = vpop.f32.mrb[29].mxu1 }
0x4c8a   :  { %3542 = vst.msk [vmem:[#allocation2] sm:$0x3] %vm3541_vm3, %v3538_v61 }
0x4c8b   :  { %4171 = shalt.err (!%p4168_p4)
}
0x4c8c   :  { %s4172_s14 = scalar_lea.hbm %s4765_s2, 32 }
0x4c8d   :  { %p4173_p5 = scmp.ne.s32.totalorder %s4765_s2, %s4172_s14  ;;  %p4176_p6 = scmp.lt.u32.totalorder %s4172_s14, %s4765_s2 }
0x4c8f   :  { %p4178_p7 = pnand %p4176_p6, %p4173_p5 }
0x4c91   :  { %4181 = shalt.err (!%p4178_p7)
}
0x4c92   :  { %3552 = dma.vmem_to_hbm [thread:$0]  %s3550_s12, 32, %s4765_s2, [#allocation3]  }
0x4c93   :  { %4182 = dma.done.wait [#allocation3], 32  }
0x4c94   :  { %4183 = vsyncadd [#allocation3], 4294967264 }
0x4c95   :  { %3556 = vsyncpa [#allocation3], 1 }

</bundles_post_ra>
